<compile_context>
chip_gen: v7x
topology: tpu7x:2x2x1
jax: 0.10.0
libtpu: 0.0.40
codegen_flags: <defaults>
</compile_context>

<pallas_src>
import functools
import math

import jax
import jax.numpy as jnp
from jax.experimental import pallas as pl
from jax.experimental.pallas import tpu as pltpu


def _round_up(x, m):
    return ((x + m - 1) // m) * m


def _vmem_limit_bytes():
    cap = 128 * 1024 * 1024
    try:  # derive a per-generation budget (v7x has only 64 MiB of VMEM)
        cap = int(pltpu.get_tpu_info().vmem_capacity_bytes)
    except Exception:
        pass
    return int(min(max(cap * 3 // 4, 32 * 1024 * 1024), 96 * 1024 * 1024))


_VMEM_LIMIT = _vmem_limit_bytes()
_NEG_BF16 = float(jnp.finfo(jnp.bfloat16).min)


# ------------------------------------------------------------------ matmul

def _matmul_affine_kernel(x_ref, w_ref, scale_ref, shift_ref, o_ref, *, relu):
    out = jnp.dot(x_ref[...], w_ref[...], preferred_element_type=jnp.float32)
    out = out * scale_ref[...] + shift_ref[...]
    if relu:
        out = jnp.maximum(out, 0.0)
    o_ref[...] = out.astype(o_ref.dtype)


def matmul_affine(x, w, scale, shift, relu=True, out_dtype=jnp.bfloat16):
    """out = maybe_relu((x @ w) * scale + shift).

    Every contraction in this net has K <= 1920, so K is consumed in a single
    block (no K grid axis, no accumulator scratch) and the affine/ReLU
    epilogue is fused into the same kernel.
    """
    M, K = x.shape
    K2, N = w.shape
    assert K == K2
    xb = x.astype(jnp.bfloat16)
    Mp = _round_up(M, 8)
    tm = Mp if Mp <= 1024 else 512            # full-M block at these sizes
    Mp = _round_up(Mp, tm)
    if Mp != M:
        xb = jnp.pad(xb, ((0, Mp - M), (0, 0)))
    out_bytes = jnp.dtype(out_dtype).itemsize
    out = pl.pallas_call(
        functools.partial(_matmul_affine_kernel, relu=relu),
        out_shape=jax.ShapeDtypeStruct((Mp, N), out_dtype),
        grid=(Mp // tm,),
        in_specs=[
            pl.BlockSpec((tm, K), lambda i: (i, 0)),
            pl.BlockSpec((K, N), lambda i: (0, 0)),
            pl.BlockSpec((1, N), lambda i: (0, 0)),
            pl.BlockSpec((1, N), lambda i: (0, 0)),
        ],
        out_specs=pl.BlockSpec((tm, N), lambda i: (i, 0)),
        compiler_params=pltpu.CompilerParams(
            dimension_semantics=("parallel",),
            vmem_limit_bytes=_VMEM_LIMIT),
        cost_estimate=pl.CostEstimate(
            flops=2 * Mp * N * K, transcendentals=0,
            bytes_accessed=2 * (Mp * K + K * N) + out_bytes * Mp * N),
    )(xb, w, scale, shift)
    return out if Mp == M else out[:M]


# ----------------------------------------------------- fused inception 1x1s

def _fused1x1_kernel(x_ref, w_ref, scale_ref, shift_ref,
                     o1_ref, o2_ref, o3_ref, *, offsets):
    out = jnp.dot(x_ref[...], w_ref[...], preferred_element_type=jnp.float32)
    out = jnp.maximum(out * scale_ref[...] + shift_ref[...], 0.0)
    for off, o_ref in zip(offsets, (o1_ref, o2_ref, o3_ref)):
        n = o_ref.shape[-1]
        o_ref[...] = out[:, off:off + n].astype(o_ref.dtype)


def fused_1x1(x_nhwc, p):
    """The three same-input 1x1 convs of an inception block as one matmul.

    The concatenated weight puts every branch at a 128-aligned column offset
    (pre-padded at build time) and the kernel writes three separate
    lane-dense outputs, so no misaligned HBM channel slicing follows.
    """
    N, H, W, C = x_nhwc.shape
    M = N * H * W
    xm = x_nhwc.reshape(M, C)
    Ntot = p['w'].shape[1]
    n1, n2, n3 = p['splits']
    Mp = _round_up(M, 8)
    tm = Mp if Mp <= 1024 else 512
    Mp = _round_up(Mp, tm)
    if Mp != M:
        xm = jnp.pad(xm, ((0, Mp - M), (0, 0)))
    outs = pl.pallas_call(
        functools.partial(_fused1x1_kernel, offsets=p['offsets']),
        out_shape=(jax.ShapeDtypeStruct((Mp, n1), jnp.bfloat16),
                   jax.ShapeDtypeStruct((Mp, n2), jnp.bfloat16),
                   jax.ShapeDtypeStruct((Mp, n3), jnp.bfloat16)),
        grid=(Mp // tm,),
        in_specs=[
            pl.BlockSpec((tm, C), lambda i: (i, 0)),
            pl.BlockSpec((C, Ntot), lambda i: (0, 0)),
            pl.BlockSpec((1, Ntot), lambda i: (0, 0)),
            pl.BlockSpec((1, Ntot), lambda i: (0, 0)),
        ],
        out_specs=(pl.BlockSpec((tm, n1), lambda i: (i, 0)),
                   pl.BlockSpec((tm, n2), lambda i: (i, 0)),
                   pl.BlockSpec((tm, n3), lambda i: (i, 0))),
        compiler_params=pltpu.CompilerParams(
            dimension_semantics=("parallel",),
            vmem_limit_bytes=_VMEM_LIMIT),
        cost_estimate=pl.CostEstimate(
            flops=2 * Mp * Ntot * C, transcendentals=0,
            bytes_accessed=2 * (Mp * C + C * Ntot + Mp * (n1 + n2 + n3))),
    )(xm, p['w'], p['scale'], p['shift'])
    y1, r3, r5 = (o[:M] if Mp != M else o for o in outs)
    return (y1.reshape(N, H, W, n1), r3.reshape(N, H, W, n2),
            r5.reshape(N, H, W, n3))


# ------------------------------------------------------------------ 3x3 conv

def _conv3x3_kernel(x_ref, w_ref, scale_ref, shift_ref, o_ref, pad_ref,
                    *, W8, relu):
    _, H, W, C = x_ref.shape
    cpad = pad_ref.shape[-1]
    # Halo + width-alignment padding is built in VMEM (no HBM pad pass).
    # The interior lands at sublane offset 8 (aligned store); the nine 3x3
    # taps then read at sublane offsets 7/8/9.
    pad_ref[...] = jnp.zeros_like(pad_ref)
    pad_ref[1:H + 1, 8:8 + W, :C] = x_ref[0]
    # In-VMEM im2col -> one matmul with K = 9 * Cin_pad (full MXU fill
    # instead of nine K=Cin taps).  Pieces are 128-lane aligned because the
    # scratch channel dim is padded to a multiple of 128, matching the
    # zero-padded rows of the pre-built weight.
    cols = []
    for dy in range(3):
        for dx in range(3):
            cols.append(pad_ref[dy:dy + H, 7 + dx:7 + dx + W8, :]
                        .reshape(H * W8, cpad))
    patch = jnp.concatenate(cols, axis=-1)                 # (H*W8, 9*cpad)
    out = jnp.dot(patch, w_ref[...], preferred_element_type=jnp.float32)
    out = out * scale_ref[...] + shift_ref[...]
    if relu:
        out = jnp.maximum(out, 0.0)
    out = out.reshape(H, W8, -1)[:, :W, :]
    o_ref[0] = out.astype(o_ref.dtype)


def conv3x3(x, p, relu=True):
    """Direct 3x3 / stride-1 / pad-1 conv + folded BN + optional ReLU."""
    N, H, W, C = x.shape
    W8 = _round_up(W, 8)
    Cpad = _round_up(C, 128)
    Cout = p['w9'].shape[1]
    assert p['w9'].shape[0] == 9 * Cpad
    x = x.astype(jnp.bfloat16)
    out = pl.pallas_call(
        functools.partial(_conv3x3_kernel, W8=W8, relu=relu),
        out_shape=jax.ShapeDtypeStruct((N, H, W, Cout), jnp.bfloat16),
        grid=(N,),
        in_specs=[
            pl.BlockSpec((1, H, W, C), lambda n: (n, 0, 0, 0)),
            pl.BlockSpec((9 * Cpad, Cout), lambda n: (0, 0)),
            pl.BlockSpec((1, Cout), lambda n: (0, 0)),
            pl.BlockSpec((1, Cout), lambda n: (0, 0)),
        ],
        out_specs=pl.BlockSpec((1, H, W, Cout), lambda n: (n, 0, 0, 0)),
        scratch_shapes=[pltpu.VMEM((H + 2, W8 + 16, Cpad), jnp.bfloat16)],
        compiler_params=pltpu.CompilerParams(
            dimension_semantics=("parallel",),
            vmem_limit_bytes=_VMEM_LIMIT),
        cost_estimate=pl.CostEstimate(
            flops=2 * 9 * N * H * W8 * Cpad * Cout, transcendentals=0,
            bytes_accessed=2 * (N * H * W * C + 9 * Cpad * Cout
                                + N * H * W * Cout)),
    )(x, p['w9'], p['scale'], p['shift'])
    # TODO(synk): for production resolutions (224x224) add an output-row tile
    #             grid axis (halo via overlapping pl.Element index_map) and a
    #             Cout tile axis -- whole-image blocks do not fit VMEM there.
    return out


# ------------------------------------------------------------------ pooling

def _maxpool3_kernel(x_ref, o_ref, pad_ref):
    _, H, W, C = x_ref.shape
    pad_ref[...] = jnp.full_like(pad_ref, _NEG_BF16)
    pad_ref[1:H + 1, 8:8 + W, :] = x_ref[0]
    # Separable 3x3 max: max over the 3 column shifts first, then the 3 rows.
    colm = jnp.maximum(pad_ref[:, 7:7 + W, :], pad_ref[:, 8:8 + W, :])
    colm = jnp.maximum(colm, pad_ref[:, 9:9 + W, :])
    m = jnp.maximum(jnp.maximum(colm[0:H], colm[1:H + 1]), colm[2:H + 2])
    o_ref[0] = m


def maxpool3(x, stride):
    """MaxPool2d(kernel=3, stride=stride, padding=1) on NHWC input."""
    N, H, W, C = x.shape
    x = x.astype(jnp.bfloat16)
    out = pl.pallas_call(
        _maxpool3_kernel,
        out_shape=jax.ShapeDtypeStruct((N, H, W, C), jnp.bfloat16),
        grid=(N,),
        in_specs=[pl.BlockSpec((1, H, W, C), lambda n: (n, 0, 0, 0))],
        out_specs=pl.BlockSpec((1, H, W, C), lambda n: (n, 0, 0, 0)),
        scratch_shapes=[pltpu.VMEM((H + 2, W + 16, C), jnp.bfloat16)],
        compiler_params=pltpu.CompilerParams(
            dimension_semantics=("parallel",),
            vmem_limit_bytes=_VMEM_LIMIT),
    )(x)
    if stride == 2:
        # TODO(synk): decimate rows/columns inside the kernel (strided pl.ds
        #             loads) instead of writing the stride-1 result to HBM.
        out = out[:, ::2, ::2, :]
    return out


def _avgpool_kernel(x_ref, o_ref):
    o_ref[...] = jnp.mean(x_ref[...].astype(jnp.float32), axis=(1, 2))


def global_avgpool(x):
    """AdaptiveAvgPool2d(1) on NHWC -> (N, C), f32."""
    N, H, W, C = x.shape
    tc = 128 if C % 128 == 0 else C
    return pl.pallas_call(
        _avgpool_kernel,
        out_shape=jax.ShapeDtypeStruct((N, C), jnp.float32),
        grid=(C // tc,),
        in_specs=[pl.BlockSpec((N, H, W, tc), lambda c: (0, 0, 0, c))],
        out_specs=pl.BlockSpec((N, tc), lambda c: (0, c)),
        compiler_params=pltpu.CompilerParams(
            dimension_semantics=("parallel",),
            vmem_limit_bytes=_VMEM_LIMIT),
    )(x.astype(jnp.bfloat16))


# ------------------------------------------------------------------ conv glue

def conv_unit(x, p, relu=True):
    """1x1 conv or fusion conv (kernel == stride) + folded BN + optional ReLU."""
    k, s = p['k'], p['s']
    N, H, W, C = x.shape
    if k == 1:
        xm = x.reshape(N * H * W, C)
        Ho, Wo = H, W
    else:
        # fusion conv: kernel_size == stride, padding 0 -> space-to-depth
        # TODO(synk): express the space-to-depth gather via a strided
        #             in-kernel load instead of this HBM reshape/transpose.
        Ho, Wo = H // s, W // s
        xm = (x.reshape(N, Ho, s, Wo, s, C)
                .transpose(0, 1, 3, 2, 4, 5)
                .reshape(N * Ho * Wo, s * s * C))
    out = matmul_affine(xm, p['w'], p['scale'], p['shift'], relu=relu)
    return out.reshape(N, Ho, Wo, p['w'].shape[1])


def conv_bn_relu(x, p, relu=True):
    if p['k'] == 3 and p['s'] == 1:
        return conv3x3(x, p, relu=relu)
    return conv_unit(x, p, relu=relu)


# ------------------------------------------------------------------ params

_KEY = [jax.random.PRNGKey(0)]


def _next_key():
    _KEY[0], k = jax.random.split(_KEY[0])
    return k


def make_conv_bn(in_ch, out_ch, k, stride=1, bias=True):
    # Conv weight init: normal(0, sqrt(2 / (k*k*out_ch)))  (reset_parameters)
    n = k * k * out_ch
    w = jax.random.normal(_next_key(), (out_ch, in_ch, k, k),
                          jnp.float32) * math.sqrt(2.0 / n)
    if bias:
        bound = 1.0 / math.sqrt(in_ch * k * k)
        conv_b = jax.random.uniform(_next_key(), (out_ch,), jnp.float32,
                                    -bound, bound)
    else:
        conv_b = jnp.zeros((out_ch,), jnp.float32)
    eps = 1e-5
    # Folded inference-mode BatchNorm (running mean 0 / var 1, gamma 1, beta 0)
    scale = jnp.ones((out_ch,), jnp.float32) / jnp.sqrt(1.0 + eps)
    shift = conv_b * scale
    w_hwio = jnp.transpose(w, (2, 3, 1, 0))            # (kh, kw, Cin, Cout)
    p = {'k': k, 's': stride,
         'scale': scale.reshape(1, out_ch),
         'shift': shift.reshape(1, out_ch),
         'w': w_hwio.reshape(k * k * in_ch, out_ch).astype(jnp.bfloat16)}
    if k == 3 and stride == 1:
        # im2col layout with Cin zero-padded to a multiple of 128, matching
        # the 128-lane-aligned pieces the conv3x3 kernel concatenates in VMEM.
        cpad = _round_up(in_ch, 128)
        w_pad = jnp.zeros((3, 3, cpad, out_ch), jnp.float32)
        w_pad = w_pad.at[:, :, :in_ch, :].set(w_hwio)
        p['w9'] = w_pad.reshape(9 * cpad, out_ch).astype(jnp.bfloat16)
    return p


def make_linear(in_f, out_f):
    bound = 1.0 / math.sqrt(in_f)
    w = jax.random.uniform(_next_key(), (out_f, in_f), jnp.float32,
                           -bound, bound)
    b = jax.random.uniform(_next_key(), (out_f,), jnp.float32, -bound, bound)
    return {'w': jnp.transpose(w).astype(jnp.bfloat16),
            'scale': jnp.ones((1, out_f), jnp.float32),
            'shift': b.reshape(1, out_f), 'k': 1, 's': 1}


FILTERS = [[64, 128, 32, 32], [128, 192, 96, 64], [192, 208, 48, 64],
           [160, 224, 64, 64], [128, 256, 64, 64], [112, 288, 64, 64],
           [256, 320, 128, 128], [256, 320, 128, 128], [384, 384, 128, 128]]
N3X3RED = [96, 128, 96, 112, 128, 144, 160, 160, 192]
N5X5RED1 = [16, 32, 16, 24, 24, 32, 32, 32, 48]


def _pad_cols(a, n_to):
    n = a.shape[1]
    return a if n == n_to else jnp.pad(a, ((0, 0), (0, n_to - n)))


def make_inception(in_planes, idx):
    n1x1, n3x3, n5x5, pool_planes = FILTERS[idx]
    n3x3red, n5x5red1, n5x5red2 = N3X3RED[idx], N5X5RED1[idx], FILTERS[idx][2]
    b1 = make_conv_bn(in_planes, n1x1, 1)
    b3_1 = make_conv_bn(in_planes, n3x3red, 1)
    b5_1 = make_conv_bn(in_planes, n5x5red1, 1)
    # Fuse the three same-input 1x1 convs into one matmul whose branch
    # columns start at 128-aligned offsets (pre-padded at build time).
    p1, p2, p3 = (_round_up(v, 128) for v in (n1x1, n3x3red, n5x5red1))
    fused = {'k': 1, 's': 1,
             'w': jnp.concatenate([_pad_cols(b1['w'], p1),
                                   _pad_cols(b3_1['w'], p2),
                                   _pad_cols(b5_1['w'], p3)], axis=1),
             'scale': jnp.concatenate([_pad_cols(b1['scale'], p1),
                                       _pad_cols(b3_1['scale'], p2),
                                       _pad_cols(b5_1['scale'], p3)], axis=1),
             'shift': jnp.concatenate([_pad_cols(b1['shift'], p1),
                                       _pad_cols(b3_1['shift'], p2),
                                       _pad_cols(b5_1['shift'], p3)], axis=1),
             'splits': (n1x1, n3x3red, n5x5red1),
             'offsets': (0, p1, p1 + p2)}
    return {'fused_1x1': fused,
            'b3_2': make_conv_bn(n3x3red, n3x3, 3),
            'b5_2': make_conv_bn(n5x5red1, n5x5red2, 3),
            'b5_3': make_conv_bn(n5x5red2, n5x5, 3),
            'bp': make_conv_bn(in_planes, pool_planes, 1)}


def make_net_params():
    in_planes = [192] + [sum(FILTERS[i]) for i in range(8)]
    incs = [make_inception(in_planes[i], i) for i in range(9)]
    blocks = [incs[0:2], incs[2:7], incs[7:9]]          # stage 0 / 1 / 2
    channels = [480, 832, 1024]
    blocks_size = [(224, 112), (112, 56), (56, 56)]
    cross = []
    for stage in range(3):
        stage_cross = []
        for to in range(stage + 1, 3):
            minif = blocks_size[stage][1] // blocks_size[to][1]
            stage_cross.append(make_conv_bn(channels[stage], channels[to],
                                            minif, stride=minif, bias=False))
        cross.append(stage_cross)
    return blocks, cross


def make_model_params(num_classes=1000):
    p = {}
    pre1 = make_conv_bn(3, 192, 3)
    pre2 = make_conv_bn(3, 192, 3)
    # pre_layers / pre_layers2 read the same image: fuse into one 3x3 conv
    # with Cout = 384 so the image block is read (and im2col'ed) once.
    p['stem'] = {'k': 3, 's': 1,
                 'w9': jnp.concatenate([pre1['w9'], pre2['w9']], axis=1),
                 'scale': jnp.concatenate([pre1['scale'], pre2['scale']],
                                          axis=1),
                 'shift': jnp.concatenate([pre1['shift'], pre2['shift']],
                                          axis=1)}
    p['blocks1'], p['cross1'] = make_net_params()
    p['lin1'] = make_linear(sum(FILTERS[-1]), num_classes)
    p['blocks2'], p['cross2'] = make_net_params()
    p['lin2'] = make_linear(sum(FILTERS[-1]), num_classes)
    return p


# ------------------------------------------------------------------ forward

def inception_forward(p, x):
    y1, r3, r5 = fused_1x1(x, p['fused_1x1'])
    y2 = conv3x3(r3, p['b3_2'])
    y3 = conv3x3(conv3x3(r5, p['b5_2']), p['b5_3'])
    y4 = conv_unit(maxpool3(x, stride=1), p['bp'])
    # TODO(synk): write the four branches directly into channel slices of a
    #             shared output (input_output_aliases) to drop this concat.
    return jnp.concatenate([y1, y2, y3, y4], axis=-1)


def _flatten_as_nchw(x_nhwc):
    n = x_nhwc.shape[0]
    return jnp.transpose(x_nhwc, (0, 3, 1, 2)).reshape(n, -1).astype(
        jnp.float32)


def forward(params, x_nchw):
    x = jnp.transpose(x_nchw, (0, 2, 3, 1)).astype(jnp.bfloat16)   # -> NHWC
    stem = conv3x3(x, params['stem'])              # fused pre1+pre2, Cout=384
    x1, x2 = stem[..., :192], stem[..., 192:]

    net1_knowledge, net2_knowledge = [], []
    cross_fusion_knowledge = None
    for stage in range(3):
        for inc in params['blocks1'][stage]:
            x1 = inception_forward(inc, x1)
        for inc in params['blocks2'][stage]:
            x2 = inception_forward(inc, x2)
        if stage < 2:  # maxpool1 / maxpool2 at the end of stages 0 and 1
            x1 = maxpool3(x1, stride=2)
            x2 = maxpool3(x2, stride=2)

        temp1, temp2 = x1, x2
        for pre in range(stage):
            temp1 = temp1 + net1_knowledge[pre][stage - pre - 1]
            temp2 = temp2 + net2_knowledge[pre][stage - pre - 1]
        # Like the PyTorch reference, crossFusionKnowledge is re-created each
        # stage, so only the last stage's pair is returned.
        cross_fusion_knowledge = [(_flatten_as_nchw(temp1),
                                   _flatten_as_nchw(temp2))]

        sk1, sk2 = [], []
        for to in range(stage + 1, 3):
            sk1.append(conv_bn_relu(x1, params['cross1'][stage][to - stage - 1]))
            sk2.append(conv_bn_relu(x2, params['cross2'][stage][to - stage - 1]))
        net1_knowledge.append(sk1)
        net2_knowledge.append(sk2)

    fmap = [jnp.transpose(x1, (0, 3, 1, 2)).astype(jnp.float32),
            jnp.transpose(x2, (0, 3, 1, 2)).astype(jnp.float32)]

    z1 = matmul_affine(global_avgpool(x1), params['lin1']['w'],
                       params['lin1']['scale'], params['lin1']['shift'],
                       relu=False, out_dtype=jnp.float32)
    z2 = matmul_affine(global_avgpool(x2), params['lin2']['w'],
                       params['lin2']['scale'], params['lin2']['shift'],
                       relu=False, out_dtype=jnp.float32)
    return z1, z2, cross_fusion_knowledge, fmap


# ------------------------------------------------------------------ main

if __name__ == "__main__":
    params = make_model_params(num_classes=1000)
    x = jax.random.normal(jax.random.PRNGKey(0), (2, 3, 8, 8), jnp.float32)

    z1, z2, cross_k, fmap = forward(params, x)
    jax.block_until_ready((z1, z2, cross_k, fmap))

    assert z1.shape == (2, 1000) and z2.shape == (2, 1000)
    assert cross_k[0][0].shape == (2, 1024 * 2 * 2)
    assert cross_k[0][1].shape == (2, 1024 * 2 * 2)
    assert fmap[0].shape == (2, 1024, 2, 2) and fmap[1].shape == (2, 1024, 2, 2)
    print("KERNEL_OK")
</pallas_src>

<mosaic_0001>
module attributes {stable_mosaic.version = 11 : i64} {
  func.func @_conv3x3_kernel(%arg0: i32, %arg1: memref<1x8x8x3xbf16, #tpu.memory_space<vmem>>, %arg2: memref<1152x384xbf16, #tpu.memory_space<vmem>>, %arg3: memref<1x384xf32, #tpu.memory_space<vmem>>, %arg4: memref<1x384xf32, #tpu.memory_space<vmem>>, %arg5: memref<1x8x8x384xbf16, #tpu.memory_space<vmem>>, %arg6: memref<10x24x128xbf16, #tpu.memory_space<vmem>>) attributes {dimension_semantics = [#tpu.dimension_semantics<parallel>], iteration_bounds = array<i64: 2>, scalar_prefetch = 0 : i64, scratch_operands = 1 : i64, tpu.core_type = #tpu.core_type<tc>, window_params = [{transform_indices = @transform_0, window_bounds = array<i64: 1, 8, 8, 3>}, {pipeline_mode = #tpu.pipeline_mode<synchronous>, transform_indices = @transform_1, window_bounds = array<i64: 1152, 384>}, {pipeline_mode = #tpu.pipeline_mode<synchronous>, transform_indices = @transform_2, window_bounds = array<i64: 1, 384>}, {pipeline_mode = #tpu.pipeline_mode<synchronous>, transform_indices = @transform_3, window_bounds = array<i64: 1, 384>}, {transform_indices = @transform_4, window_bounds = array<i64: 1, 8, 8, 384>}]} {
    %cst = arith.constant 0.000000e+00 : bf16
    %0 = vector.broadcast %cst : bf16 to vector<10x24x128xbf16>
    %c0 = arith.constant 0 : index
    %c0_0 = arith.constant 0 : index
    %c0_1 = arith.constant 0 : index
    %1 = vector.load %arg6[%c0, %c0_0, %c0_1] : memref<10x24x128xbf16, #tpu.memory_space<vmem>>, vector<10x24x128xbf16>
    tpu.vector_store %arg6[%c0, %c0_0, %c0_1], %0 {strides = array<i32>} : memref<10x24x128xbf16, #tpu.memory_space<vmem>>, vector<10x24x128xbf16>,
    %c0_2 = arith.constant 0 : index
    %c0_3 = arith.constant 0 : index
    %c0_4 = arith.constant 0 : index
    %c0_5 = arith.constant 0 : index
    %2 = vector.load %arg1[%c0_2, %c0_3, %c0_4, %c0_5] : memref<1x8x8x3xbf16, #tpu.memory_space<vmem>>, vector<1x8x8x3xbf16>
    %3 = vector.shape_cast %2 : vector<1x8x8x3xbf16> to vector<8x8x3xbf16>
    %c1 = arith.constant 1 : index
    %c8 = arith.constant 8 : index
    %c0_6 = arith.constant 0 : index
    %4 = vector.load %arg6[%c1, %c8, %c0_6] : memref<10x24x128xbf16, #tpu.memory_space<vmem>>, vector<8x8x3xbf16>
    tpu.vector_store %arg6[%c1, %c8, %c0_6], %3 {strides = array<i32>} : memref<10x24x128xbf16, #tpu.memory_space<vmem>>, vector<8x8x3xbf16>,
    %c0_7 = arith.constant 0 : index
    %c7 = arith.constant 7 : index
    %c0_8 = arith.constant 0 : index
    %5 = vector.load %arg6[%c0_7, %c7, %c0_8] : memref<10x24x128xbf16, #tpu.memory_space<vmem>>, vector<8x8x128xbf16>
    %6 = vector.shape_cast %5 : vector<8x8x128xbf16> to vector<64x128xbf16>
    %c0_9 = arith.constant 0 : index
    %c8_10 = arith.constant 8 : index
    %c0_11 = arith.constant 0 : index
    %7 = vector.load %arg6[%c0_9, %c8_10, %c0_11] : memref<10x24x128xbf16, #tpu.memory_space<vmem>>, vector<8x8x128xbf16>
    %8 = vector.shape_cast %7 : vector<8x8x128xbf16> to vector<64x128xbf16>
    %c0_12 = arith.constant 0 : index
    %c9 = arith.constant 9 : index
    %c0_13 = arith.constant 0 : index
    %9 = vector.load %arg6[%c0_12, %c9, %c0_13] : memref<10x24x128xbf16, #tpu.memory_space<vmem>>, vector<8x8x128xbf16>
    %10 = vector.shape_cast %9 : vector<8x8x128xbf16> to vector<64x128xbf16>
    %c1_14 = arith.constant 1 : index
    %c7_15 = arith.constant 7 : index
    %c0_16 = arith.constant 0 : index
    %11 = vector.load %arg6[%c1_14, %c7_15, %c0_16] : memref<10x24x128xbf16, #tpu.memory_space<vmem>>, vector<8x8x128xbf16>
    %12 = vector.shape_cast %11 : vector<8x8x128xbf16> to vector<64x128xbf16>
    %c1_17 = arith.constant 1 : index
    %c8_18 = arith.constant 8 : index
    %c0_19 = arith.constant 0 : index
    %13 = vector.load %arg6[%c1_17, %c8_18, %c0_19] : memref<10x24x128xbf16, #tpu.memory_space<vmem>>, vector<8x8x128xbf16>
    %14 = vector.shape_cast %13 : vector<8x8x128xbf16> to vector<64x128xbf16>
    %c1_20 = arith.constant 1 : index
    %c9_21 = arith.constant 9 : index
    %c0_22 = arith.constant 0 : index
    %15 = vector.load %arg6[%c1_20, %c9_21, %c0_22] : memref<10x24x128xbf16, #tpu.memory_space<vmem>>, vector<8x8x128xbf16>
    %16 = vector.shape_cast %15 : vector<8x8x128xbf16> to vector<64x128xbf16>
    %c2 = arith.constant 2 : index
    %c7_23 = arith.constant 7 : index
    %c0_24 = arith.constant 0 : index
    %17 = vector.load %arg6[%c2, %c7_23, %c0_24] : memref<10x24x128xbf16, #tpu.memory_space<vmem>>, vector<8x8x128xbf16>
    %18 = vector.shape_cast %17 : vector<8x8x128xbf16> to vector<64x128xbf16>
    %c2_25 = arith.constant 2 : index
    %c8_26 = arith.constant 8 : index
    %c0_27 = arith.constant 0 : index
    %19 = vector.load %arg6[%c2_25, %c8_26, %c0_27] : memref<10x24x128xbf16, #tpu.memory_space<vmem>>, vector<8x8x128xbf16>
    %20 = vector.shape_cast %19 : vector<8x8x128xbf16> to vector<64x128xbf16>
    %c2_28 = arith.constant 2 : index
    %c9_29 = arith.constant 9 : index
    %c0_30 = arith.constant 0 : index
    %21 = vector.load %arg6[%c2_28, %c9_29, %c0_30] : memref<10x24x128xbf16, #tpu.memory_space<vmem>>, vector<8x8x128xbf16>
    %22 = vector.shape_cast %21 : vector<8x8x128xbf16> to vector<64x128xbf16>
    %23 = tpu.concatenate %6, %8, %10, %12, %14, %16, %18, %20, %22 in 1 : vector<64x128xbf16>, vector<64x128xbf16>, vector<64x128xbf16>, vector<64x128xbf16>, vector<64x128xbf16>, vector<64x128xbf16>, vector<64x128xbf16>, vector<64x128xbf16>, vector<64x128xbf16> -> vector<64x1152xbf16>
    %c0_31 = arith.constant 0 : index
    %c0_32 = arith.constant 0 : index
    %24 = vector.load %arg2[%c0_31, %c0_32] : memref<1152x384xbf16, #tpu.memory_space<vmem>>, vector<1152x384xbf16>
    %cst_33 = arith.constant dense<0.000000e+00> : vector<64x384xf32>
    %25 = tpu.matmul %23, %24, %cst_33 {dimension_numbers = #tpu.dot_dimension_numbers<[1], [0], [0], [1], [0, 0, 1, 1], [], []>} : vector<64x1152xbf16>, vector<1152x384xbf16>, vector<64x384xf32> -> vector<64x384xf32>
    %c0_34 = arith.constant 0 : index
    %c0_35 = arith.constant 0 : index
    %26 = vector.load %arg3[%c0_34, %c0_35] : memref<1x384xf32, #tpu.memory_space<vmem>>, vector<1x384xf32>
    %27 = vector.broadcast %26 : vector<1x384xf32> to vector<64x384xf32>
    %28 = arith.mulf %25, %27 : vector<64x384xf32>
    %c0_36 = arith.constant 0 : index
    %c0_37 = arith.constant 0 : index
    %29 = vector.load %arg4[%c0_36, %c0_37] : memref<1x384xf32, #tpu.memory_space<vmem>>, vector<1x384xf32>
    %30 = vector.broadcast %29 : vector<1x384xf32> to vector<64x384xf32>
    %31 = arith.addf %28, %30 : vector<64x384xf32>
    %cst_38 = arith.constant 0.000000e+00 : f32
    %32 = vector.broadcast %cst_38 : f32 to vector<64x384xf32>
    %33 = arith.maximumf %31, %32 : vector<64x384xf32>
    %34 = vector.shape_cast %33 : vector<64x384xf32> to vector<8x8x384xf32>
    %35 = arith.truncf %34 : vector<8x8x384xf32> to vector<8x8x384xbf16>
    %c0_39 = arith.constant 0 : index
    %c0_40 = arith.constant 0 : index
    %c0_41 = arith.constant 0 : index
    %c0_42 = arith.constant 0 : index
    %36 = vector.load %arg5[%c0_39, %c0_40, %c0_41, %c0_42] : memref<1x8x8x384xbf16, #tpu.memory_space<vmem>>, vector<1x8x8x384xbf16>
    %37 = vector.shape_cast %36 : vector<1x8x8x384xbf16> to vector<8x8x384xbf16>
    %38 = vector.shape_cast %35 : vector<8x8x384xbf16> to vector<1x8x8x384xbf16>
    tpu.vector_store %arg5[%c0_39, %c0_40, %c0_41, %c0_42], %38 {strides = array<i32>} : memref<1x8x8x384xbf16, #tpu.memory_space<vmem>>, vector<1x8x8x384xbf16>,
    return
  }
  func.func @transform_0(%arg0: i32) -> (i32, i32, i32, i32) {
    %c0_i32 = arith.constant 0 : i32
    %c0_i32_0 = arith.constant 0 : i32
    %c0_i32_1 = arith.constant 0 : i32
    %c0_i32_2 = arith.constant 0 : i32
    return %arg0, %c0_i32, %c0_i32_0, %c0_i32_1 : i32, i32, i32, i32
  }
  func.func @transform_1(%arg0: i32) -> (i32, i32) {
    %c0_i32 = arith.constant 0 : i32
    %c0_i32_0 = arith.constant 0 : i32
    %c0_i32_1 = arith.constant 0 : i32
    return %c0_i32, %c0_i32_0 : i32, i32
  }
  func.func @transform_2(%arg0: i32) -> (i32, i32) {
    %c0_i32 = arith.constant 0 : i32
    %c0_i32_0 = arith.constant 0 : i32
    %c0_i32_1 = arith.constant 0 : i32
    return %c0_i32, %c0_i32_0 : i32, i32
  }
  func.func @transform_3(%arg0: i32) -> (i32, i32) {
    %c0_i32 = arith.constant 0 : i32
    %c0_i32_0 = arith.constant 0 : i32
    %c0_i32_1 = arith.constant 0 : i32
    return %c0_i32, %c0_i32_0 : i32, i32
  }
  func.func @transform_4(%arg0: i32) -> (i32, i32, i32, i32) {
    %c0_i32 = arith.constant 0 : i32
    %c0_i32_0 = arith.constant 0 : i32
    %c0_i32_1 = arith.constant 0 : i32
    %c0_i32_2 = arith.constant 0 : i32
    return %arg0, %c0_i32, %c0_i32_0, %c0_i32_1 : i32, i32, i32, i32
  }
}

</mosaic_0001>

<bundles_post_ra>
// kernel: tpu_custom_call.1
= control target key start
LH: loop header
LB: loop body
LE: loop exit
PB: predicated region body
PF: predicated region fallthrough
CT: control target
= control target key end

     0   :  { %9 = vsyncpa [#allocation4], 0  ;;  %s5674_s0 = inlined_call_operand.hbm [shape: bf16[2,8,8,3], index: 0, kind: input, shape index: {}]   ;;  %s5675_s1 = inlined_call_operand.hbm [shape: bf16[1152,384], index: 1, kind: input, shape index: {}]   ;;  %s5676_s2 = inlined_call_operand.hbm [shape: f32[1,384], index: 2, kind: input, shape index: {}]   ;;  %s5677_s3 = inlined_call_operand.hbm [shape: f32[1,384], index: 3, kind: input, shape index: {}]   ;;  %s5678_s4 = inlined_call_operand.hbm [shape: bf16[2,8,8,384], index: 4, kind: output, shape index: {}]  }
   0x1   :  { %11 = vsyncpa [#allocation4 + $0x1], 0 }
   0x2   :  { %12 = vsyncpa [#allocation7], 0 }
   0x3   :  { %13 = vsyncpa [#allocation10], 0 }
   0x4   :  { %14 = vsyncpa [#allocation5], 0 }
   0x5   :  { %16 = vsyncpa [#allocation5 + $0x1], 0  ;;  %s4748_s15 = smov 0   ;;  %s4750_s16 = smov 0  }
   0x6   :  { %s4752_s17 = smov 0   ;;  %s4754_s18 = smov 0  }
   0x7 LB: > { %s4769_s19 = sadd.s32 4294967295, %s4709_s18   ;;  %s3552_s20 = sadd.s32 4294967294, %s4709_s18   ;;  %s4709_s18 = sphi %s4754_s18, %s5705_s18   ;;  %s4705_s17 = sphi %s4752_s17, %s5704_s17   ;;  %s4701_s16 = sphi %s4750_s16, %s5703_s16   ;;  %s4697_s15 = sphi %s4748_s15, %s5702_s15  }
   0x8   : > { %p42_p0 = scmp.ne.s32.totalorder %s4701_s16, %s4697_s15  ;;  %p5679_p1 = scmp.eq.s32.totalorder %s4769_s19, 0 }
   0x9   : > { %p135_p3 = scmp.eq.s32.totalorder %s3552_s20, 1  ;;  %p3553_p5 = scmp.ge.s32.totalorder %s4709_s18, 1 }
   0xa   : > { %p4778_p4 = por %p5679_p1, %p42_p0  ;;  %p142_p7 = scmp.lt.s32.totalorder %s4709_s18, 3 }
   0xb   : > { %p4783_p6 = por %p135_p3, %p42_p0  ;;  %s4711_s24 = smov [#allocation6]  }
   0xc   : > { %s5682_s21 = scalar_select %p4778_p4, 1, 0 }
   0xd   : > { %s5683_s22 = scalar_select %p4783_p6, 1, 0 }
   0xe   : > { %p4788_p8 = pnand %p3553_p5, %p142_p7  ;;  %s154_s25 = sshll.u32 %s4711_s24, 4  ;;  %s4792_s25 = int_to_ptr.vmem [resolvable:$true] %s154_s25 }
   0xf   : > { %s4712_s27 = smov [#allocation8]   ;;  %s4713_s29 = smov [#allocation9]  }
  0x10   : > { %s5684_s23 = scalar_select %p4788_p8, 1, 0 }
  0x11   : > { %p4156_p9 = pneg %p4788_p8  ;;  %s168_s28 = sshll.u32 %s4712_s27, 4  ;;  %s4803_s28 = int_to_ptr.vmem [resolvable:$true] %s168_s28 }
  0x12   : > { %s4805_s30 = sshll.u32 %s4713_s29, 4  ;;  %s4521_s7 = scalar_lea.hbm %s5675_s1, 27648  ;;  %s180_s30 = int_to_ptr.vmem [resolvable:$true] %s4805_s30 }
  0x13   : > { %p4799_p11 = pnand %p4156_p9, %p5679_p1  ;;  %p4522_p12 = scmp.ne.s32.totalorder %s5675_s1, %s4521_s7 }
  0x14   : > { %p4528_p5 = scmp.lt.u32.totalorder %s4521_s7, %s5675_s1 }
  0x15   : > { %p4815_p13 = pneg %p4799_p11 }
  0x17   : > { %p4524_p0 = pnand %p4815_p13, %p4522_p12 }
  0x19   : > { %p4525_p3 = pneg %p4524_p0 }
  0x1b   : > { %p4530_p7 = pnand %p4528_p5, %p4525_p3 }
  0x1d   : > { %4533 = shalt.err (!%p4530_p7)
}
  0x1e   : > { %s4534_s13 = scalar_lea.vmem %s4792_s25, 27648  ;;  %p4542_p2 = scmp.lt.s32.totalorder %s4792_s25, %s4792_s25 }
  0x1f   : > { %p4535_p9 = scmp.ne.s32.totalorder %s4792_s25, %s4534_s13  ;;  %p4543_p6 = scmp.lt.s32.totalorder %s4534_s13, %s4534_s13 }
  0x21   : > { %p4537_p10 = pnand %p4535_p9, %p4815_p13  ;;  %p4544_p12 = por %p4543_p6, %p4542_p2 }
  0x23   : > { %p4538_p1 = pneg %p4537_p10 }
  0x25   : > { %p4545_p0 = pnand %p4544_p12, %p4538_p1 }
  0x27   : > { %4548 = shalt.err (!%p4545_p0)
}
  0x28   : > { %s4714_s14 = smov 192   ;;  %s4715_s20 = smov 12  }
  0x29   : > { %4159 = dma.hbm_to_vmem [thread:$0]  (!%p4799_p11), %s5675_s1, 27648, %s4792_s25, [#allocation7], %s4714_s14, %s4714_s14, %s4715_s20  }
  0x2a   : > { %s4549_s6 = scalar_lea.hbm %s5676_s2, 48 }
  0x2b   : > { %p4550_p2 = scmp.ne.s32.totalorder %s5676_s2, %s4549_s6  ;;  %p4556_p10 = scmp.lt.u32.totalorder %s4549_s6, %s5676_s2 }
  0x2d   : > { %p4552_p1 = pnand %p4550_p2, %p4815_p13 }
  0x2f   : > { %p4553_p6 = pneg %p4552_p1 }
  0x31   : > { %p4558_p3 = pnand %p4556_p10, %p4553_p6 }
  0x33   : > { %4561 = shalt.err (!%p4558_p3)
}
  0x34   : > { %s4562_s25 = scalar_lea.vmem %s4803_s28, 48  ;;  %s4569_s12 = scalar_lea.vmem %s4803_s28, 64 }
  0x35   : > { %p4563_p5 = scmp.ne.s32.totalorder %s4803_s28, %s4562_s25  ;;  %p4570_p12 = scmp.lt.s32.totalorder %s4803_s28, %s4803_s28 }
  0x36   : > { %p4571_p0 = scmp.lt.s32.totalorder %s4569_s12, %s4562_s25 }
  0x37   : > { %p4565_p7 = pnand %p4563_p5, %p4815_p13 }
  0x38   : > { %p4572_p2 = por %p4571_p0, %p4570_p12 }
  0x39   : > { %p4566_p9 = pneg %p4565_p7 }
  0x3b   : > { %p4573_p1 = pnand %p4572_p2, %p4566_p9 }
  0x3d   : > { %4576 = shalt.err (!%p4573_p1)
}
  0x3e   : > { %4162 = dma.hbm_to_vmem [thread:$0]  (!%p4799_p11), %s5676_s2, 48, %s4803_s28, [#allocation7]  }
  0x3f   : > { %s4577_s27 = scalar_lea.hbm %s5677_s3, 48 }
  0x40   : > { %p4578_p6 = scmp.ne.s32.totalorder %s5677_s3, %s4577_s27  ;;  %p4584_p5 = scmp.lt.u32.totalorder %s4577_s27, %s5677_s3 }
  0x42   : > { %p4580_p10 = pnand %p4578_p6, %p4815_p13 }
  0x44   : > { %p4581_p3 = pneg %p4580_p10 }
  0x46   : > { %p4586_p7 = pnand %p4584_p5, %p4581_p3 }
  0x48   : > { %4589 = shalt.err (!%p4586_p7)
}
  0x49   : > { %s4590_s8 = scalar_lea.vmem %s180_s30, 48  ;;  %s4597_s28 = scalar_lea.vmem %s180_s30, 64 }
  0x4a   : > { %p4591_p9 = scmp.ne.s32.totalorder %s180_s30, %s4590_s8  ;;  %p4598_p2 = scmp.lt.s32.totalorder %s180_s30, %s180_s30 }
  0x4b   : > { %p4599_p1 = scmp.lt.s32.totalorder %s4597_s28, %s4590_s8 }
  0x4c   : > { %p4593_p12 = pnand %p4591_p9, %p4815_p13 }
  0x4d   : > { %p4600_p4 = por %p4599_p1, %p4598_p2 }
  0x4e   : > { %p4594_p0 = pneg %p4593_p12 }
  0x50   : > { %p4601_p8 = pnand %p4600_p4, %p4594_p0 }
  0x52   : > { %4604 = shalt.err (!%p4601_p8)
}
  0x53   : > { %4165 = dma.hbm_to_vmem [thread:$0]  (!%p4799_p11), %s5677_s3, 48, %s180_s30, [#allocation10]  }
  0x54   : > { %s4880_s10 = sadd.s32 1, %s4709_s18   ;;  %s29_s26 = sadd.s32 1, %s4705_s17 }
  0x55   : > { %s26_s25 = ssub.s32 %s4709_s18, %s4880_s10  ;;  %p36_p8 = scmp.ne.s32.totalorder %s4705_s17, %s4701_s16 }
  0x56   : > { %p27_p4 = scmp.eq.s32.totalorder %s26_s25, 0  ;;  %p37_p13 = scmp.eq.s32.totalorder %s4709_s18, 0 }
  0x57   : > { %p4177_p6 = scmp.lt.s32.totalorder %s4709_s18, 2  ;;  %p5687_p3 = scmp.eq.s32.totalorder %s4769_s19, 1 }
  0x58   : > { %s4890_s12 = scalar_select %p27_p4, %s4705_s17, %s29_s26  }
  0x59   : > { %p38_p10 = por %p37_p13, %p36_p8  ;;  %p4894_p5 = por %p5687_p3, %p36_p8 }
  0x5a   : > { %s190_s14 = sand.u32 1, %s4705_s17   ;;  %s3861_s20 = sshll.u32 %s4709_s18, 9 }
  0x5b   : > { %s3558_s30 = sshll.u32 %s190_s14, 5  ;;  %s4903_s29 = scalar_lea.hbm %s5674_s0, %s3861_s20 }
  0x5c   : > { %s194_s5 = scalar_lea.vmem [#allocation3], %s3558_s30  ;;  %p4905_p11 = pnand %p4177_p6, %p38_p10 }
  0x5d   : > { %s201_s6 = sshll.u32 %s194_s5, 4  ;;  %s4911_s8 = scalar_lea.sflag [#allocation4], %s190_s14  ;;  %s4909_s6 = int_to_ptr.vmem [resolvable:$true] %s201_s6 }
  0x5e   : > { %s4605_s28 = scalar_lea.hbm %s4903_s29, 512  ;;  %p4607_p9 = pneg %p4905_p11 }
  0x5f   : > { %p4606_p7 = scmp.ne.s32.totalorder %s4903_s29, %s4605_s28  ;;  %s4610_s25 = scalar_lea.hbm %s5674_s0, 1024 }
  0x60   : > { %p4611_p2 = scmp.lt.u32.totalorder %s4903_s29, %s5674_s0  ;;  %p4612_p1 = scmp.lt.u32.totalorder %s4610_s25, %s4605_s28 }
  0x61   : > { %p4608_p12 = pnand %p4607_p9, %p4606_p7  ;;  %p4614_p8 = scmp.lt.u32.totalorder %s4605_s28, %s4903_s29 }
  0x62   : > { %p4613_p4 = por %p4612_p1, %p4611_p2 }
  0x63   : > { %p4609_p0 = pneg %p4608_p12 }
  0x64   : > { %p4615_p13 = por %p4614_p8, %p4613_p4 }
  0x66   : > { %p4616_p6 = pnand %p4615_p13, %p4609_p0 }
  0x68   : > { %4619 = shalt.err (!%p4616_p6)
}
  0x69   : > { %s4620_s14 = scalar_lea.vmem %s4909_s6, 512  ;;  %s4716_s30 = smov [#allocation3]  }
  0x6a   : > { %p4621_p10 = scmp.ne.s32.totalorder %s4909_s6, %s4620_s14  ;;  %s4625_s24 = sshll.u32 %s4716_s30, 4  ;;  %s4626_s24 = int_to_ptr.vmem [resolvable:$false] %s4625_s24 }
  0x6b   : > { %s4627_s27 = scalar_lea.vmem %s4626_s24, 1024  ;;  %p4628_p12 = scmp.lt.s32.totalorder %s4909_s6, %s4626_s24 }
  0x6c   : > { %p4623_p3 = pnand %p4621_p10, %p4607_p9  ;;  %p4629_p2 = scmp.lt.s32.totalorder %s4627_s27, %s4620_s14 }
  0x6e   : > { %p4624_p7 = pneg %p4623_p3  ;;  %p4630_p1 = por %p4629_p2, %p4628_p12 }
  0x70   : > { %p4631_p4 = pnand %p4630_p1, %p4624_p7 }
  0x72   : > { %4634 = shalt.err (!%p4631_p4)
}
  0x73   : > { %s4717_s5 = smov 64   ;;  %s4718_s28 = smov 4  }
  0x74   : > { %4169 = dma.hbm_to_vmem [thread:$0]  (!%p4905_p11), %s4903_s29, 512, %s4909_s6, %s4911_s8, %s4717_s5, %s4717_s5, %s4718_s28  }
  0x75   : > { %p5690_p9 = scmp.ne.s32.totalorder %s5684_s23, 0 }
  0x76   : > { %s4942_s9 = sand.u32 (!%p5690_p9), 1, %s4701_s16   ;;  %p5691_p0 = scmp.ne.s32.totalorder (!%p5690_p9), %s5682_s21, 0 }
  0x77   : > { %213 = sbr.rel (%p5690_p9) target bundleno = 631 (0x277), region = 36  ;;  %s3562_s11 = sshll.u32 (!%p5690_p9), %s4942_s9, 5 }
  0x78   : > { %s216_s25 = scalar_lea.sflag (!%p5690_p9), [#allocation4], %s4942_s9  ;;  %s4946_s26 = scalar_lea.vmem (!%p5690_p9), [#allocation3], %s3562_s11 }
  0x7e   : > { %4680 = dma.done.wait (%p5691_p0), %s216_s25, 512  }
  0x7f   : > { %4682 = vsyncadd (%p5691_p0), %s216_s25, 4294966784  ;;  %p5692_p11 = scmp.eq.s32.totalorder %s4769_s19, 0 }
  0x81   : > { %4684 = dma.done.wait (%p5692_p11), [#allocation7], 27696   ;;  %p5693_p8 = pmov %p5692_p11 }
  0x83   : > { %4686 = vsyncadd (%p5693_p8), [#allocation7], 4294939600  ;;  %p5694_p13 = pmov %p5693_p8 }
  0x84   : > { %p5695_p6 = pmov %p5693_p8 }
  0x85   : > { %4688 = dma.done.wait (%p5694_p13), [#allocation10], 48  }
  0x86   : > { %4690 = vsyncadd (%p5695_p6), [#allocation10], 4294967248  ;;  %v4719_v0 = vmov 0   ;;  %v4224_v1 = vld [vmem:[#allocation6 + $0x4] ss:$12 sps:$4 sm:$0xff]   ;;  %vm296_vm0 = vcmask 19456  }
  0x87   : > { %258 = vst [vmem:[#allocation2 + $0x4] sm:$0xf] %v4719_v0  ;;  %261 = vst [vmem:[#allocation2 + $0x10] sm:$0xf] %v4719_v0  ;;  %v4226_v2 = vld [vmem:[#allocation6 + $0x184] ss:$12 sps:$4 sm:$0xff]   ;;  %2520 = vmatprep.subr.bf16.mxu1 %v4224_v1 }
  0x88   : > { %257 = vst [vmem:[#allocation2] sm:$0xf] %v4719_v0  ;;  %259 = vst [vmem:[#allocation2 + $0x8] sm:$0xf] %v4719_v0  ;;  %v4228_v3 = vld [vmem:[#allocation6] ss:$12 sps:$4 sm:$0xff]   ;;  %2593 = vmatprep.subr.bf16.mxu0 %v4226_v2 }
  0x89   : > { %260 = vst [vmem:[#allocation2 + $0xc] sm:$0xf] %v4719_v0  ;;  %262 = vst [vmem:[#allocation2 + $0x14] sm:$0xf] %v4719_v0  ;;  %v4229_v4 = vld [vmem:[#allocation6 + $0x180] ss:$12 sps:$4 sm:$0xff]   ;;  %2521 = vmatpush1.bf16.msra.mxu1 %v4228_v3 }
  0x8a   : > { %263 = vst [vmem:[#allocation2 + $0x18] sm:$0xf] %v4719_v0  ;;  %264 = vst [vmem:[#allocation2 + $0x1c] sm:$0xf] %v4719_v0  ;;  %v4230_v5 = vld [vmem:[#allocation6 + $0x1c] ss:$12 sps:$4 sm:$0xff]   ;;  %2594 = vmatpush1.bf16.msra.mxu0 %v4229_v4 }
  0x8b   : > { %265 = vst [vmem:[#allocation2 + $0x20] sm:$0xf] %v4719_v0  ;;  %266 = vst [vmem:[#allocation2 + $0x24] sm:$0xf] %v4719_v0  ;;  %v4232_v6 = vld [vmem:[#allocation6 + $0x19c] ss:$12 sps:$4 sm:$0xff]   ;;  %2522 = vmatprep.subr.bf16.mxu1 %v4230_v5 }
  0x8c   : > { %267 = vst [vmem:[#allocation2 + $0x28] sm:$0xf] %v4719_v0  ;;  %268 = vst [vmem:[#allocation2 + $0x2c] sm:$0xf] %v4719_v0  ;;  %v4234_v7 = vld [vmem:[#allocation6 + $0x18] ss:$12 sps:$4 sm:$0xff]   ;;  %2595 = vmatprep.subr.bf16.mxu0 %v4232_v6 }
  0x8d   : > { %269 = vst [vmem:[#allocation2 + $0x30] sm:$0xf] %v4719_v0  ;;  %270 = vst [vmem:[#allocation2 + $0x34] sm:$0xf] %v4719_v0  ;;  %v4235_v8 = vld [vmem:[#allocation6 + $0x198] ss:$12 sps:$4 sm:$0xff]   ;;  %2523 = vmatpush1.bf16.msra.mxu1 %v4234_v7 }
  0x8e   : > { %271 = vst [vmem:[#allocation2 + $0x38] sm:$0xf] %v4719_v0  ;;  %272 = vst [vmem:[#allocation2 + $0x3c] sm:$0xf] %v4719_v0  ;;  %v4236_v9 = vld [vmem:[#allocation6 + $0x34] ss:$12 sps:$4 sm:$0xff]   ;;  %2596 = vmatpush1.bf16.msra.mxu0 %v4235_v8 }
  0x8f   : > { %273 = vst [vmem:[#allocation2 + $0x40] sm:$0xf] %v4719_v0  ;;  %274 = vst [vmem:[#allocation2 + $0x44] sm:$0xf] %v4719_v0  ;;  %v4238_v10 = vld [vmem:[#allocation6 + $0x1b4] ss:$12 sps:$4 sm:$0xff]   ;;  %2524 = vmatprep.subr.bf16.mxu1 %v4236_v9 }
  0x90   : > { %275 = vst [vmem:[#allocation2 + $0x48] sm:$0xf] %v4719_v0  ;;  %276 = vst [vmem:[#allocation2 + $0x4c] sm:$0xf] %v4719_v0  ;;  %v4240_v11 = vld [vmem:[#allocation6 + $0x30] ss:$12 sps:$4 sm:$0xff]   ;;  %2597 = vmatprep.subr.bf16.mxu0 %v4238_v10 }
  0x91   : > { %277 = vst [vmem:[#allocation2 + $0x50] sm:$0xf] %v4719_v0  ;;  %278 = vst [vmem:[#allocation2 + $0x54] sm:$0xf] %v4719_v0  ;;  %v4241_v12 = vld [vmem:[#allocation6 + $0x1b0] ss:$12 sps:$4 sm:$0xff]   ;;  %2525 = vmatpush1.bf16.msra.mxu1 %v4240_v11 }
  0x92   : > { %279 = vst [vmem:[#allocation2 + $0x58] sm:$0xf] %v4719_v0  ;;  %280 = vst [vmem:[#allocation2 + $0x5c] sm:$0xf] %v4719_v0  ;;  %v4242_v13 = vld [vmem:[#allocation6 + $0x4c] ss:$12 sps:$4 sm:$0xff]   ;;  %2598 = vmatpush1.bf16.msra.mxu0 %v4241_v12 }
  0x93   : > { %281 = vst [vmem:[#allocation2 + $0x60] sm:$0xf] %v4719_v0  ;;  %282 = vst [vmem:[#allocation2 + $0x64] sm:$0xf] %v4719_v0  ;;  %v4244_v14 = vld [vmem:[#allocation6 + $0x1cc] ss:$12 sps:$4 sm:$0xff]   ;;  %2526 = vmatprep.subr.bf16.mxu1 %v4242_v13 }
  0x94   : > { %283 = vst [vmem:[#allocation2 + $0x68] sm:$0xf] %v4719_v0  ;;  %284 = vst [vmem:[#allocation2 + $0x6c] sm:$0xf] %v4719_v0  ;;  %v4246_v15 = vld [vmem:[#allocation6 + $0x48] ss:$12 sps:$4 sm:$0xff]   ;;  %2599 = vmatprep.subr.bf16.mxu0 %v4244_v14 }
  0x95   : > { %285 = vst [vmem:[#allocation2 + $0x70] sm:$0xf] %v4719_v0  ;;  %286 = vst [vmem:[#allocation2 + $0x74] sm:$0xf] %v4719_v0  ;;  %v4247_v16 = vld [vmem:[#allocation6 + $0x1c8] ss:$12 sps:$4 sm:$0xff]   ;;  %2527 = vmatpush1.bf16.msra.mxu1 %v4246_v15 }
  0x96   : > { %v4248_v17 = vld [vmem:[#allocation6 + $0x64] ss:$12 sps:$4 sm:$0xff]   ;;  %v4252_v19 = vld [vmem:[#allocation6 + $0x60] ss:$12 sps:$4 sm:$0xff]   ;;  %2600 = vmatpush1.bf16.msra.mxu0 %v4247_v16  ;;  %v4254_v21 = vld [vmem:[#allocation6 + $0x7c] ss:$12 sps:$4 sm:$0xff]  }
  0x97   : > { %v4250_v18 = vld [vmem:[#allocation6 + $0x1e4] ss:$12 sps:$4 sm:$0xff]   ;;  %v4253_v20 = vld [vmem:[#allocation6 + $0x1e0] ss:$12 sps:$4 sm:$0xff]   ;;  %2528 = vmatprep.subr.bf16.mxu1 %v4248_v17  ;;  %v4256_v22 = vld [vmem:[#allocation6 + $0x1fc] ss:$12 sps:$4 sm:$0xff]  }
  0x98   : > { %2601 = vmatprep.subr.bf16.mxu0 %v4250_v18  ;;  %v4258_v23 = vld [vmem:[#allocation6 + $0x78] ss:$12 sps:$4 sm:$0xff]   ;;  %v4260_v25 = vld [vmem:[#allocation6 + $0x94] ss:$12 sps:$4 sm:$0xff]   ;;  %v4264_v27 = vld [vmem:[#allocation6 + $0x90] ss:$12 sps:$4 sm:$0xff]  }
  0x99   : > { %2529 = vmatpush1.bf16.msra.mxu1 %v4252_v19  ;;  %v4259_v24 = vld [vmem:[#allocation6 + $0x1f8] ss:$12 sps:$4 sm:$0xff]   ;;  %v4262_v26 = vld [vmem:[#allocation6 + $0x214] ss:$12 sps:$4 sm:$0xff]   ;;  %v4265_v28 = vld [vmem:[#allocation6 + $0x210] ss:$12 sps:$4 sm:$0xff]  }
  0x9a   : > { %2602 = vmatpush1.bf16.msra.mxu0 %v4253_v20  ;;  %2530 = vmatprep.subr.bf16.mxu1 %v4254_v21  ;;  %v4266_v29 = vld [vmem:[#allocation6 + $0xac] ss:$12 sps:$4 sm:$0xff]   ;;  %v4270_v31 = vld [vmem:[#allocation6 + $0xa8] ss:$12 sps:$4 sm:$0xff]   ;;  %v4272_v33 = vld [vmem:[#allocation6 + $0xc4] ss:$12 sps:$4 sm:$0xff]  }
  0x9b   : > { %2603 = vmatprep.subr.bf16.mxu0 %v4256_v22  ;;  %v4268_v30 = vld [vmem:[#allocation6 + $0x22c] ss:$12 sps:$4 sm:$0xff]   ;;  %v4271_v32 = vld [vmem:[#allocation6 + $0x228] ss:$12 sps:$4 sm:$0xff]   ;;  %v4274_v34 = vld [vmem:[#allocation6 + $0x244] ss:$12 sps:$4 sm:$0xff]  }
  0x9c   : > { %v4276_v35 = vld [vmem:[#allocation6 + $0xc0] ss:$12 sps:$4 sm:$0xff]   ;;  %v4278_v37 = vld [vmem:[#allocation6 + $0xdc] ss:$12 sps:$4 sm:$0xff]   ;;  %v4282_v39 = vld [vmem:[#allocation6 + $0xd8] ss:$12 sps:$4 sm:$0xff]  }
  0x9d   : > { %2531 = vmatpush1.bf16.msra.mxu1 %v4258_v23  ;;  %v4277_v36 = vld [vmem:[#allocation6 + $0x240] ss:$12 sps:$4 sm:$0xff]   ;;  %v4280_v38 = vld [vmem:[#allocation6 + $0x25c] ss:$12 sps:$4 sm:$0xff]   ;;  %v4283_v40 = vld [vmem:[#allocation6 + $0x258] ss:$12 sps:$4 sm:$0xff]  }
  0x9e   : > { %2604 = vmatpush1.bf16.msra.mxu0 %v4259_v24  ;;  %2532 = vmatprep.subr.bf16.mxu1 %v4260_v25  ;;  %v4284_v41 = vld [vmem:[#allocation6 + $0xf4] ss:$12 sps:$4 sm:$0xff]   ;;  %v4288_v43 = vld [vmem:[#allocation6 + $0xf0] ss:$12 sps:$4 sm:$0xff]   ;;  %v4290_v45 = vld [vmem:[#allocation6 + $0x10c] ss:$12 sps:$4 sm:$0xff]  }
  0x9f   : > { %2605 = vmatprep.subr.bf16.mxu0 %v4262_v26  ;;  %v4286_v42 = vld [vmem:[#allocation6 + $0x274] ss:$12 sps:$4 sm:$0xff]   ;;  %v4289_v44 = vld [vmem:[#allocation6 + $0x270] ss:$12 sps:$4 sm:$0xff]   ;;  %v4292_v46 = vld [vmem:[#allocation6 + $0x28c] ss:$12 sps:$4 sm:$0xff]  }
  0xa0   : > { %v4294_v47 = vld [vmem:[#allocation6 + $0x108] ss:$12 sps:$4 sm:$0xff]   ;;  %v287_v49 = vld [vmem:[%s4946_s26] sm:$0xf]  ;;  %v4296_v50 = vld [vmem:[#allocation6 + $0x124] ss:$12 sps:$4 sm:$0xff]  }
  0xa1   : > { %2533 = vmatpush1.bf16.msra.mxu1 %v4264_v27  ;;  %v4295_v48 = vld [vmem:[#allocation6 + $0x288] ss:$12 sps:$4 sm:$0xff]   ;;  %297 = vst.msk [vmem:[#allocation2 + $0x10] sm:$0xf] %vm296_vm0, %v287_v49  ;;  %v306_v51 = vld [vmem:[#allocation2 + $0x4] sm:$0xf] }
  0xa2   : > { %2606 = vmatpush1.bf16.msra.mxu0 %v4265_v28  ;;  %2534 = vmatprep.subr.bf16.mxu1 %v4266_v29  ;;  %v305_v52 = vld [vmem:[#allocation2] sm:$0x8]  ;;  %v307_v53 = vld [vmem:[#allocation2 + $0xc] sm:$0x8]  ;;  %v4298_v54 = vld [vmem:[#allocation6 + $0x2a4] ss:$12 sps:$4 sm:$0xff]  }
  0xa3   : > { %2607 = vmatprep.subr.bf16.mxu0 %v4268_v30  ;;  %v330_v55 = vshrl.u32 %v306_v51, 16  ;;  %v333_v56 = vshll.u32 %v306_v51, 16  ;;  %vm321_vm1 = vsmask.f32 256  ;;  %vm322_vm2 = vsmask.f32 4368 }
  0xa4   : > { %v288_v57 = vld [vmem:[%s4946_s26 + $0x4] sm:$0xf]  ;;  %v325_v58 = vshrl.u32 %v305_v52, 16  ;;  %v338_v59 = vshrl.u32 %v307_v53, 16  ;;  %v511_v60 = vld [vmem:[#allocation2 + $0xc] sm:$0x8]  ;;  %vm5013_vm5 = vmor %vm321_vm1, %vm322_vm2 }
  0xa5   : > { %2535 = vmatpush1.bf16.msra.mxu1 %v4270_v31  ;;  %298 = vst.msk [vmem:[#allocation2 + $0x1c] sm:$0xf] %vm296_vm0, %v288_v57  ;;  %vm436_vm3 = vsmask.f32 3328  ;;  %vm437_vm4 = vsmask.f32 7440 }
  0xa6   : > { %2608 = vmatpush1.bf16.msra.mxu0 %v4271_v32  ;;  %2536 = vmatprep.subr.bf16.mxu1 %v4272_v33  ;;  %v4300_v61 = vld [vmem:[#allocation6 + $0x120] ss:$12 sps:$4 sm:$0xff]   ;;  %v439_v63 = vrot.slane %v330_v55, 4  ;;  %v440_v1 = vrot.slane %v333_v56, 5  ;;  %v4302_v3 = vld [vmem:[#allocation6 + $0x13c] ss:$12 sps:$4 sm:$0xff]   ;;  %vm5023_vm6 = vmor %vm436_vm3, %vm437_vm4 }
  0xa7   : > { %2609 = vmatprep.subr.bf16.mxu0 %v4274_v34  ;;  %v4301_v62 = vld [vmem:[#allocation6 + $0x2a0] ss:$12 sps:$4 sm:$0xff]   ;;  %v4304_v4 = vld [vmem:[#allocation6 + $0x2bc] ss:$12 sps:$4 sm:$0xff]   ;;  %v332_v5 = vrot.slane %v330_v55, 7  ;;  %v4994_v6 = vrot.slane %v325_v58, 11 }
  0xa8   : > { %v513_v2 = vld [vmem:[#allocation2 + $0x18] sm:$0x8]  ;;  %v4996_v7 = vrot.slane %v338_v59, 11  ;;  %v528_v8 = vshrl.u32 %v511_v60, 16  ;;  %v428_v10 = vld [vmem:[#allocation2 + $0x8] sm:$0x1]  ;;  %v441_v16 = vor.u32 %v440_v1, %v439_v63 }
  0xa9   : > { %2537 = vmatpush1.bf16.msra.mxu1 %v4276_v35  ;;  %v541_v9 = vshrl.u32 %v513_v2, 16  ;;  %v4306_v11 = vld [vmem:[#allocation6 + $0x138] ss:$12 sps:$4 sm:$0xff]   ;;  %v429_v15 = vld [vmem:[#allocation2 + $0x14] sm:$0x1]  ;;  %v335_v23 = vor.u32 %v333_v56, %v332_v5  ;;  %v444_v26 = vshll.u32 %v428_v10, 16 }
  0xaa   : > { %2610 = vmatpush1.bf16.msra.mxu0 %v4277_v36  ;;  %2538 = vmatprep.subr.bf16.mxu1 %v4278_v37  ;;  %v4307_v12 = vld [vmem:[#allocation6 + $0x2b8] ss:$12 sps:$4 sm:$0xff]   ;;  %v4308_v17 = vld [vmem:[#allocation6 + $0x154] ss:$12 sps:$4 sm:$0xff]   ;;  %v453_v27 = vshll.u32 %v429_v15, 16  ;;  %v3574_v34 = vrot.slane %v528_v8, 11 }
  0xab   : > { %2611 = vmatprep.subr.bf16.mxu0 %v4280_v38  ;;  %v308_v13 = vld [vmem:[#allocation2 + $0x10] sm:$0xf]  ;;  %v4310_v18 = vld [vmem:[#allocation6 + $0x2d4] ss:$12 sps:$4 sm:$0xff]   ;;  %v4312_v32 = vld [vmem:[#allocation6 + $0x150] ss:$12 sps:$4 sm:$0xff]   ;;  %v336_v56 = vsel %vm5013_vm5, %v4994_v6, %v335_v23 }
  0xac   : > { %v4998_v14 = vld [vmem:[#allocation2 + $0x10] sm:$0xf]  ;;  %v343_v19 = vshrl.u32 %v308_v13, 16  ;;  %v346_v20 = vshll.u32 %v308_v13, 16  ;;  %v5000_v21 = vcombine.low %v306_v51, %v308_v13  ;;  %v5003_v24 = vld [vmem:[#allocation2 + $0x1c] sm:$0xf] }
  0xad   : > { %2539 = vmatpush1.bf16.msra.mxu1 %v4282_v39  ;;  %v533_v22 = vshrl.u32 %v4998_v14, 16  ;;  %v536_v25 = vshll.u32 %v4998_v14, 16  ;;  %v4313_v33 = vld [vmem:[#allocation6 + $0x2d0] ss:$12 sps:$4 sm:$0xff]   ;;  %v3575_v35 = vrot.slane %v541_v9, 11  ;;  %v546_v36 = vshrl.u32 %v5003_v24, 16 }
  0xae   : > { %2612 = vmatpush1.bf16.msra.mxu0 %v4283_v40  ;;  %2540 = vmatprep.subr.bf16.mxu1 %v4284_v41  ;;  %v345_v28 = vrot.slane %v343_v19, 7  ;;  %v448_v29 = vrot.slane %v343_v19, 4  ;;  %v449_v30 = vrot.slane %v346_v20, 5  ;;  %v549_v37 = vshll.u32 %v5003_v24, 16  ;;  %v4314_v38 = vld [vmem:[#allocation6 + $0x16c] ss:$12 sps:$4 sm:$0xff]  }
  0xaf   : > { %2613 = vmatprep.subr.bf16.mxu0 %v4286_v42  ;;  %v535_v31 = vrot.slane %v533_v22, 7  ;;  %2552 = vmatprep.mubr.bf16.mxu1 %v5000_v21  ;;  %v442_v41 = vrot.slane %v441_v16, 4  ;;  %v446_v42 = vrot.slane %v444_v26, 5  ;;  %v4316_v49 = vld [vmem:[#allocation6 + $0x2ec] ss:$12 sps:$4 sm:$0xff]   ;;  %s4138_s21 = smul.u32 96, %s4942_s9 }
  0xb0   : > { %v4318_v51 = vld [vmem:[#allocation6 + $0x168] ss:$12 sps:$4 sm:$0xff]   ;;  %v5042_v58 = vld [vmem:[#allocation2 + $0x1c] sm:$0xf]  ;;  %v309_v59 = vld [vmem:[#allocation2 + $0x18] sm:$0x8] }
  0xb1   : > { %2541 = vmatpush1.bf16.msra.mxu1 %v4288_v43  ;;  %v538_v40 = vor.u32 %v536_v25, %v535_v31  ;;  %v450_v43 = vor.u32 %v449_v30, %v448_v29  ;;  %v4319_v55 = vld [vmem:[#allocation6 + $0x2e8] ss:$12 sps:$4 sm:$0xff]   ;;  %v447_v57 = vsel %vm5023_vm6, %v442_v41, %v446_v42  ;;  %v356_v2 = vshrl.u32 %v5042_v58, 16  ;;  %v4321_v5 = vld [vmem:[#allocation6 + $0x300] ss:$12 sps:$4 sm:$0xff]   ;;  %s5554_s23 = scalar_lea.vmem [#allocation11], %s4138_s21 }
  0xb2   : > { %2614 = vmatpush1.bf16.msra.mxu0 %v4289_v44  ;;  %2542 = vmatprep.subr.bf16.mxu1 %v4290_v45  ;;  %v348_v44 = vor.u32 %v346_v20, %v345_v28  ;;  %v548_v45 = vrot.slane %v546_v36, 7  ;;  %v4324_v63 = vld [vmem:[#allocation6 + $0xc8] ss:$12 sps:$4 sm:$0xff]   ;;  %v311_v6 = vld [vmem:[#allocation2 + $0x24] sm:$0x8]  ;;  %v359_v10 = vshll.u32 %v5042_v58, 16 }
  0xb3   : > { %2615 = vmatprep.subr.bf16.mxu0 %v4292_v46  ;;  %v539_v52 = vsel %vm5013_vm5, %v3574_v34, %v538_v40  ;;  %v358_v9 = vrot.slane %v356_v2, 7  ;;  %v4329_v13 = vld [vmem:[#allocation6 + $0xe0] ss:$12 sps:$4 sm:$0xff]   ;;  %v364_v16 = vshrl.u32 %v311_v6, 16  ;;  %v291_v30 = vld [vmem:[%s4946_s26 + $0x10] sm:$0xf] }
  0xb4   : > { %v551_v53 = vor.u32 %v549_v37, %v548_v45  ;;  %v349_v60 = vsel %vm5013_vm5, %v4996_v7, %v348_v44  ;;  %v4330_v28 = vld [vmem:[#allocation6 + $0x20] ss:$12 sps:$4 sm:$0xff]   ;;  %301 = vst.msk [vmem:[#allocation2 + $0x40] sm:$0xf] %vm296_vm0, %v291_v30  ;;  %v4332_v34 = vld [vmem:[#allocation6 + $0x330] ss:$12 sps:$4 sm:$0xff]  }
  0xb5   : > { %2543 = vmatpush1.bf16.msra.mxu1 %v4294_v47  ;;  %v455_v47 = vrot.slane %v453_v27, 5  ;;  %v5054_v8 = vcombine.low %v336_v56, %v349_v60  ;;  %v361_v26 = vor.u32 %v359_v10, %v358_v9  ;;  %v290_v27 = vld [vmem:[%s4946_s26 + $0xc] sm:$0xf]  ;;  %v4334_v29 = vld [vmem:[#allocation6 + $0x334] ss:$12 sps:$4 sm:$0xff]   ;;  %s4139_s29 = smul.u32 1536, %s4769_s19 }
  0xb6   : > { %2616 = vmatpush1.bf16.msra.mxu0 %v4295_v48  ;;  %2544 = vmatprep.subr.bf16.mxu1 %v4296_v50  ;;  %v5029_v48 = vcombine.low %v4998_v14, %v5003_v24  ;;  %v451_v50 = vrot.slane %v450_v43, 4  ;;  %300 = vst.msk [vmem:[#allocation2 + $0x34] sm:$0xf] %vm296_vm0, %v290_v27  ;;  %v4336_v42 = vld [vmem:[#allocation6 + $0x38] ss:$12 sps:$4 sm:$0xff]   ;;  %s3450_s6 = sshll.u32 %s5554_s23, 4  ;;  %s5628_s6 = int_to_ptr.vmem [resolvable:$true] %s3450_s6 }
  0xb7   : > { %2617 = vmatprep.subr.bf16.mxu0 %v4298_v54  ;;  %v289_v54 = vld [vmem:[%s4946_s26 + $0x8] sm:$0xf]  ;;  %v4339_v43 = vld [vmem:[#allocation6 + $0x34c] ss:$12 sps:$4 sm:$0xff]   ;;  %v4340_v45 = vld [vmem:[#allocation6 + $0x110] ss:$12 sps:$4 sm:$0xff]   ;;  %s5626_s20 = scalar_lea.hbm %s5678_s4, %s4139_s29 }
  0xb8   : > { %299 = vst.msk [vmem:[#allocation2 + $0x28] sm:$0xf] %vm296_vm0, %v289_v54  ;;  %v456_v1 = vsel %vm5023_vm6, %v451_v50, %v455_v47  ;;  %v4337_v50 = vld [vmem:[#allocation6 + $0x348] ss:$12 sps:$4 sm:$0xff]   ;;  %v4345_v54 = vld [vmem:[#allocation6 + $0x364] ss:$12 sps:$4 sm:$0xff]  }
  0xb9   : > { %2545 = vmatpush1.bf16.msra.mxu1 %v4300_v61  ;;  %v552_v61 = vsel %vm5013_vm5, %v3575_v35, %v551_v53  ;;  %v5057_v7 = vcombine.low %v447_v57, %v456_v1  ;;  %v313_v35 = vld [vmem:[#allocation2 + $0x30] sm:$0x8]  ;;  %v4402_v24 = vld [vmem:[#allocation6 + $0x2f0] ss:$12 sps:$4 sm:$0xff]   ;;  %s3437_s19 = scalar_lea.sflag [#allocation5], %s4942_s9  ;;  %s4635_s14 = scalar_lea.vmem %s5628_s6, 1536 }
  0xba   : > { %2618 = vmatpush1.bf16.msra.mxu0 %v4301_v62  ;;  %2546 = vmatprep.subr.bf16.mxu1 %v4302_v3  ;;  %v4323_v62 = vld [vmem:[#allocation6 + $0x304] ss:$12 sps:$4 sm:$0xff]   ;;  %v5052_v3 = vcombine.low %v539_v52, %v552_v61  ;;  %v377_v47 = vshrl.u32 %v313_v35, 16  ;;  %v293_v6 = vld [vmem:[%s4946_s26 + $0x18] sm:$0xf]  ;;  %p4636_p10 = scmp.ne.s32.totalorder %s5628_s6, %s4635_s14  ;;  %s4720_s30 = smov [#allocation11]  }
  0xbb   : > { %2619 = vmatprep.subr.bf16.mxu0 %v4304_v4  ;;  %v351_v4 = vshrl.u32 %v309_v59, 16  ;;  %v4341_v52 = vld [vmem:[#allocation6 + $0x50] ss:$12 sps:$4 sm:$0xff]   ;;  %303 = vst.msk [vmem:[#allocation2 + $0x58] sm:$0xf] %vm296_vm0, %v293_v6  ;;  %s4639_s24 = sshll.u32 %s4720_s30, 4  ;;  %s4640_s24 = int_to_ptr.vmem [resolvable:$false] %s4639_s24 }
  0xbc   : > { %2625 = vmatprep.mubr.bf16.mxu0 %v5052_v3  ;;  %v4348_v30 = vld [vmem:[#allocation6 + $0x378] ss:$12 sps:$4 sm:$0xff]   ;;  %v4356_v35 = vld [vmem:[#allocation6 + $0x394] ss:$12 sps:$4 sm:$0xff]   ;;  %v4510_v39 = vld [vmem:[#allocation6 + $0x67c] ss:$12 sps:$4 sm:$0xff]   ;;  %p4637_p3 = pnand %p4636_p10, %p4894_p5  ;;  %p4642_p12 = scmp.lt.s32.totalorder %s5628_s6, %s4640_s24 }
  0xbd   : > { %2547 = vmatpush1.bf16.msra.mxu1 %v4306_v11  ;;  %v4325_v11 = vld [vmem:[#allocation6 + $0x8] ss:$12 sps:$4 sm:$0xff]   ;;  %v3568_v15 = vrot.slane %v351_v4, 11  ;;  %v5089_v53 = vld [vmem:[#allocation2 + $0x34] sm:$0xf]  ;;  %s4641_s27 = scalar_lea.vmem %s4640_s24, 3072 }
  0xbe   : > { %2620 = vmatpush1.bf16.msra.mxu0 %v4307_v12  ;;  %2548 = vmatprep.subr.bf16.mxu1 %v4308_v17  ;;  %v4328_v12 = vld [vmem:[#allocation6 + $0x31c] ss:$12 sps:$4 sm:$0xff]   ;;  %v382_v56 = vshrl.u32 %v5089_v53, 16  ;;  %v385_v57 = vshll.u32 %v5089_v53, 16  ;;  %v4343_v4 = vld [vmem:[#allocation6 + $0x360] ss:$12 sps:$4 sm:$0xff]   ;;  %p4638_p7 = pneg %p4637_p3  ;;  %p4643_p2 = scmp.lt.s32.totalorder %s4641_s27, %s4635_s14 }
  0xbf   : > { %2621 = vmatprep.subr.bf16.mxu0 %v4310_v18  ;;  %v5062_v17 = vld [vmem:[#allocation2 + $0x28] sm:$0xf]  ;;  %v4326_v18 = vld [vmem:[#allocation6 + $0x318] ss:$12 sps:$4 sm:$0xff]   ;;  %v362_v40 = vsel %vm5013_vm5, %v3568_v15, %v361_v26  ;;  %v5119_v26 = vrot.slane %v356_v2, 4 }
  0xc0   : > { %v369_v19 = vshrl.u32 %v5062_v17, 16  ;;  %v372_v20 = vshll.u32 %v5062_v17, 16  ;;  %v5070_v23 = vcombine.low %v5042_v58, %v5062_v17  ;;  %v384_v1 = vrot.slane %v382_v56, 7  ;;  %v4359_v17 = vld [vmem:[#allocation6 + $0x3a8] ss:$12 sps:$4 sm:$0xff]   ;;  %p4644_p1 = por %p4643_p2, %p4642_p12 }
  0xc1   : > { %2549 = vmatpush1.bf16.msra.mxu1 %v4312_v32  ;;  %v3569_v32 = vrot.slane %v364_v16, 11  ;;  %v4350_v16 = vld [vmem:[#allocation6 + $0x37c] ss:$12 sps:$4 sm:$0xff]   ;;  %v5159_v6 = vrot.slane %v382_v56, 4 }
  0xc2   : > { %2622 = vmatpush1.bf16.msra.mxu0 %v4313_v33  ;;  %2550 = vmatprep.subr.bf16.mxu1 %v4314_v38  ;;  %v371_v31 = vrot.slane %v369_v19, 7  ;;  %v4335_v33 = vld [vmem:[#allocation6 + $0xf8] ss:$12 sps:$4 sm:$0xff]   ;;  %v387_v15 = vor.u32 %v385_v57, %v384_v1  ;;  %v5131_v2 = vrot.slane %v369_v19, 4  ;;  %p4645_p4 = pnand %p4644_p1, %p4638_p7 }
  0xc3   : > { %2623 = vmatprep.subr.bf16.mxu0 %v4316_v49  ;;  %v315_v38 = vld [vmem:[#allocation2 + $0x3c] sm:$0x8] }
  0xc4   : > { %v374_v41 = vor.u32 %v372_v20, %v371_v31  ;;  %v4351_v31 = vld [vmem:[#allocation6 + $0x140] ss:$12 sps:$4 sm:$0xff]  }
  0xc5   : > { %2551 = vmatpush1.bf16.msra.mxu1 %v4318_v51  ;;  %v390_v51 = vshrl.u32 %v315_v38, 16 }
  0xc6   : > { %2624 = vmatpush1.bf16.msra.mxu0 %v4319_v55  ;;  %3878 = vmatprep.subr.bf16.mxu1 %v4324_v63  ;;  %v375_v44 = vsel %vm5013_vm5, %v3569_v32, %v374_v41  ;;  %v5092_v55 = vld [vmem:[#allocation2 + $0x40] sm:$0xf]  ;;  %v292_v63 = vld [vmem:[%s4946_s26 + $0x14] sm:$0xf] }
  0xc7   : > { %2666 = vmatprep.subr.bf16.mxu0 %v4323_v62  ;;  %v5087_v49 = vcombine.low %v362_v40, %v375_v44  ;;  %v395_v59 = vshrl.u32 %v5092_v55, 16  ;;  %v398_v60 = vshll.u32 %v5092_v55, 16  ;;  %v5100_v61 = vcombine.low %v5089_v53, %v5092_v55  ;;  %302 = vst.msk [vmem:[#allocation2 + $0x4c] sm:$0xf] %vm296_vm0, %v292_v63  ;;  %v5140_v40 = vld [vmem:[#allocation2 + $0x58] sm:$0xf] }
  0xc8   : > { %2553 = vmatmul.mubr.bf16.vlgmr.msra.gmra.mrb[0].mxu1 %v5054_v8  ;;  %v3570_v62 = vrot.slane %v377_v47, 11  ;;  %v424_v44 = vshll.u32 %v5140_v40, 16  ;;  %v4361_v63 = vld [vmem:[#allocation6 + $0x3ac] ss:$12 sps:$4 sm:$0xff]  }
  0xc9   : > { %2626 = vmatmul.mubr.bf16.vlgmr.msra.gmra.mrb[0].mxu0 %v5057_v7  ;;  %3879 = vmatpush3.bf16.msra.mxu1 %v4325_v11  ;;  %v397_v9 = vrot.slane %v395_v59, 7  ;;  %v3571_v11 = vrot.slane %v390_v51, 11  ;;  %v4364_v53 = vld [vmem:[#allocation6 + $0x3c0] ss:$12 sps:$4 sm:$0xff]  }
  0xca   : > { %2667 = vmatpush1.bf16.msra.mxu0 %v4321_v5  ;;  %3880 = vmatprep.subr.bf16.mxu1 %v4329_v13  ;;  %v4346_v5 = vld [vmem:[#allocation6 + $0x128] ss:$12 sps:$4 sm:$0xff]   ;;  %v5113_v13 = vrot.slane %v536_v25, 5  ;;  %v5125_v25 = vrot.slane %v359_v10, 5 }
  0xcb   : > { %2668 = vmatprep.subr.bf16.mxu0 %v4328_v12  ;;  %2562 = vmatprep.mubr.bf16.mxu1 %v5070_v23  ;;  %v4347_v12 = vld [vmem:[#allocation6 + $0x68] ss:$12 sps:$4 sm:$0xff]   ;;  %v400_v27 = vor.u32 %v398_v60, %v397_v9 }
  0xcd   : > { %3881 = vmatpush3.bf16.msra.mxu1 %v4330_v28  ;;  %v319_v28 = vld [vmem:[#allocation2 + $0x54] sm:$0x8]  ;;  %v401_v32 = vsel %vm5013_vm5, %v3571_v11, %v400_v27  ;;  %v5165_v11 = vrot.slane %v385_v57, 5  ;;  %v4367_v57 = vld [vmem:[#allocation6 + $0x248] ss:$12 sps:$4 sm:$0xff]  }
  0xce   : > { %2669 = vmatpush1.bf16.msra.mxu0 %v4326_v18  ;;  %3882 = vmatprep.subr.bf16.mxu1 %v4335_v33  ;;  %v317_v18 = vld [vmem:[#allocation2 + $0x48] sm:$0x8]  ;;  %v416_v10 = vshrl.u32 %v319_v28, 16  ;;  %v5137_v38 = vld [vmem:[#allocation2 + $0x4c] sm:$0xf] }
  0xcf   : > { %2670 = vmatprep.subr.bf16.mxu0 %v4334_v29  ;;  %v388_v29 = vsel %vm5013_vm5, %v3570_v62, %v387_v15  ;;  %v403_v58 = vshrl.u32 %v317_v18, 16  ;;  %v408_v19 = vshrl.u32 %v5137_v38, 16  ;;  %v411_v41 = vshll.u32 %v5137_v38, 16  ;;  %v4358_v62 = vld [vmem:[#allocation6 + $0x98] ss:$12 sps:$4 sm:$0xff]  }
  0xd0   : > { %2563 = vmatmul.mubr.bf16.gmra.mrb[4].mxu1 %v5087_v49  ;;  %v5135_v33 = vcombine.low %v388_v29, %v401_v32  ;;  %v3573_v51 = vrot.slane %v416_v10, 11  ;;  %v515_v27 = vld [vmem:[#allocation2 + $0x24] sm:$0x8]  ;;  %v517_v28 = vld [vmem:[#allocation2 + $0x30] sm:$0x8]  ;;  %v459_v29 = vor.u32 %v5125_v25, %v5119_v26 }
  0xd1   : > { %3883 = vmatpush3.bf16.msra.mxu1 %v4336_v42  ;;  %2572 = vmatprep.mubr.bf16.mxu1 %v5100_v61  ;;  %v4357_v42 = vld [vmem:[#allocation6 + $0x158] ss:$12 sps:$4 sm:$0xff]   ;;  %v410_v47 = vrot.slane %v408_v19, 7  ;;  %v554_v32 = vshrl.u32 %v515_v27, 16  ;;  %v567_v10 = vshrl.u32 %v517_v28, 16 }
  0xd2   : > { %2671 = vmatpush1.bf16.msra.mxu0 %v4332_v34  ;;  %3884 = vmatprep.subr.bf16.mxu1 %v4340_v45  ;;  %v4352_v34 = vld [vmem:[#allocation6 + $0x80] ss:$12 sps:$4 sm:$0xff]   ;;  %v5148_v45 = vcombine.low %v5137_v38, %v5140_v40  ;;  %v4371_v26 = vld [vmem:[#allocation6 + $0x3dc] ss:$12 sps:$4 sm:$0xff]  }
  0xd3   : > { %2672 = vmatprep.subr.bf16.mxu0 %v4339_v43  ;;  %v421_v43 = vshrl.u32 %v5140_v40, 16  ;;  %v413_v1 = vor.u32 %v411_v41, %v410_v47  ;;  %v5198_v47 = vrot.slane %v408_v19, 4  ;;  %v3576_v55 = vrot.slane %v554_v32, 11  ;;  %v4374_v27 = vld [vmem:[#allocation6 + $0x3f0] ss:$12 sps:$4 sm:$0xff]  }
  0xd4   : > { %v460_v19 = vrot.slane %v459_v29, 4  ;;  %v4376_v38 = vld [vmem:[#allocation6 + $0x3f4] ss:$12 sps:$4 sm:$0xff]   ;;  %v4377_v40 = vld [vmem:[#allocation6 + $0x278] ss:$12 sps:$4 sm:$0xff]  }
  0xd5   : > { %3885 = vmatpush3.bf16.msra.mxu1 %v4341_v52  ;;  %v4354_v52 = vld [vmem:[#allocation6 + $0x390] ss:$12 sps:$4 sm:$0xff]   ;;  %v519_v32 = vld [vmem:[#allocation2 + $0x3c] sm:$0x8] }
  0xd6   : > { %2673 = vmatpush1.bf16.msra.mxu0 %v4337_v50  ;;  %3886 = vmatprep.subr.bf16.mxu1 %v4346_v5  ;;  %v3572_v50 = vrot.slane %v403_v58, 11  ;;  %v467_v5 = vrot.slane %v372_v20, 5  ;;  %v4363_v20 = vld [vmem:[#allocation6 + $0xb0] ss:$12 sps:$4 sm:$0xff]  }
  0xd7   : > { %2674 = vmatprep.subr.bf16.mxu0 %v4345_v54  ;;  %v423_v54 = vrot.slane %v421_v43, 7 }
  0xd8   : > { %2573 = vmatmul.mubr.bf16.gmra.mrb[8].mxu1 %v5135_v33  ;;  %v414_v15 = vsel %vm5013_vm5, %v3572_v50, %v413_v1  ;;  %v4369_v50 = vld [vmem:[#allocation6 + $0x3d8] ss:$12 sps:$4 sm:$0xff]  }
  0xd9   : > { %3887 = vmatpush3.bf16.msra.mxu1 %v4347_v12  ;;  %2582 = vmatprep.mubr.bf16.mxu1 %v5148_v45  ;;  %v426_v9 = vor.u32 %v424_v44, %v423_v54  ;;  %v5169_v12 = vrot.slane %v395_v59, 4  ;;  %v5177_v59 = vld [vmem:[#allocation2 + $0x28] sm:$0xf] }
  0xda   : > { %2675 = vmatpush1.bf16.msra.mxu0 %v4343_v4  ;;  %3888 = vmatprep.subr.bf16.mxu1 %v4351_v31  ;;  %v4362_v4 = vld [vmem:[#allocation6 + $0x170] ss:$12 sps:$4 sm:$0xff]   ;;  %v562_v58 = vshll.u32 %v5177_v59, 16 }
  0xdb   : > { %2676 = vmatprep.subr.bf16.mxu0 %v4350_v16  ;;  %v427_v56 = vsel %vm5013_vm5, %v3573_v51, %v426_v9  ;;  %v4366_v16 = vld [vmem:[#allocation6 + $0x3c4] ss:$12 sps:$4 sm:$0xff]   ;;  %v5183_v31 = vld [vmem:[#allocation2 + $0x34] sm:$0xf]  ;;  %v3577_v51 = vrot.slane %v567_v10, 11 }
  0xdc   : > { %v5175_v18 = vcombine.low %v414_v15, %v427_v56  ;;  %v572_v25 = vshrl.u32 %v5183_v31, 16  ;;  %v5210_v15 = vrot.slane %v411_v41, 5  ;;  %v4372_v56 = vld [vmem:[#allocation6 + $0x260] ss:$12 sps:$4 sm:$0xff]  }
  0xdd   : > { %3889 = vmatpush3.bf16.msra.mxu1 %v4352_v34  ;;  %v559_v34 = vshrl.u32 %v5177_v59, 16 }
  0xde   : > { %2677 = vmatpush1.bf16.msra.mxu0 %v4348_v30  ;;  %3890 = vmatprep.subr.bf16.mxu1 %v4357_v42  ;;  %v468_v30 = vor.u32 %v467_v5, %v5131_v2  ;;  %v575_v2 = vshll.u32 %v5183_v31, 16  ;;  %v5196_v42 = vcombine.low %v5177_v59, %v5183_v31  ;;  %v4438_v31 = vld [vmem:[#allocation6 + $0x398] ss:$12 sps:$4 sm:$0xff]  }
  0xdf   : > { %2678 = vmatprep.subr.bf16.mxu0 %v4356_v35  ;;  %v5189_v35 = vrot.slane %v398_v60, 5  ;;  %v561_v60 = vrot.slane %v559_v34, 7 }
  0xe0   : > { %2583 = vmatmul.mubr.bf16.gmra.mrb[12].mxu1 %v5175_v18  ;;  %v469_v1 = vrot.slane %v468_v30, 4  ;;  %v4381_v30 = vld [vmem:[#allocation6 + $0x40c] ss:$12 sps:$4 sm:$0xff]   ;;  %v667_v59 = vrot.slane %v575_v2, 5 }
  0xe1   : > { %3891 = vmatpush3.bf16.msra.mxu1 %v4358_v62  ;;  %2917 = vmatprep.mubr.bf16.mxu1 %v5000_v21  ;;  %v4368_v21 = vld [vmem:[#allocation6 + $0x188] ss:$12 sps:$4 sm:$0xff]   ;;  %v564_v54 = vor.u32 %v562_v58, %v561_v60  ;;  %v580_v60 = vshrl.u32 %v519_v32, 16 }
  0xe2   : > { %2679 = vmatpush1.bf16.msra.mxu0 %v4354_v52  ;;  %3892 = vmatprep.subr.bf16.mxu1 %v4362_v4  ;;  %v574_v52 = vrot.slane %v572_v25, 7  ;;  %v430_v62 = vld [vmem:[#allocation2 + $0x20] sm:$0x1] }
  0xe3   : > { %2680 = vmatprep.subr.bf16.mxu0 %v4361_v63  ;;  %v431_v63 = vld [vmem:[#allocation2 + $0x2c] sm:$0x1]  ;;  %v462_v5 = vshll.u32 %v430_v62, 16  ;;  %v4382_v62 = vld [vmem:[#allocation6 + $0x290] ss:$12 sps:$4 sm:$0xff]  }
  0xe4   : > { %v577_v4 = vor.u32 %v575_v2, %v574_v52  ;;  %v471_v9 = vshll.u32 %v431_v63, 16  ;;  %v4442_v2 = vld [vmem:[#allocation6 + $0x470] ss:$12 sps:$4 sm:$0xff]  }
  0xe5   : > { %3893 = vmatpush3.bf16.msra.mxu1 %v4363_v20  ;;  %v5218_v20 = vrot.slane %v424_v44, 5  ;;  %v464_v41 = vrot.slane %v462_v5, 5  ;;  %v4386_v5 = vld [vmem:[#allocation6 + $0x424] ss:$12 sps:$4 sm:$0xff]  }
  0xe6   : > { %2681 = vmatpush1.bf16.msra.mxu0 %v4359_v17  ;;  %3918 = vmatprep.subr.bf16.mxu1 %v4367_v57  ;;  %v5214_v17 = vrot.slane %v421_v43, 4  ;;  %v578_v57 = vsel %vm5013_vm5, %v3577_v51, %v577_v4  ;;  %v473_v28 = vrot.slane %v471_v9, 5 }
  0xe7   : > { %2682 = vmatprep.subr.bf16.mxu0 %v4366_v16  ;;  %v565_v16 = vsel %vm5013_vm5, %v3576_v55, %v564_v54  ;;  %v465_v44 = vsel %vm5023_vm6, %v460_v19, %v464_v41  ;;  %v4378_v55 = vld [vmem:[#allocation6 + $0x1b8] ss:$12 sps:$4 sm:$0xff]   ;;  %v4379_v54 = vld [vmem:[#allocation6 + $0x408] ss:$12 sps:$4 sm:$0xff]  }
  0xe8   : > { %2918 = vmatmul.mubr.bf16.vlgmr.msra.gmra.mrb[16].mxu1 %v5054_v8  ;;  %v5225_v43 = vcombine.low %v565_v16, %v578_v57  ;;  %v474_v29 = vsel %vm5023_vm6, %v469_v1, %v473_v28  ;;  %v5235_v8 = vld [vmem:[#allocation2 + $0x40] sm:$0xf]  ;;  %v486_v1 = vor.u32 %v5189_v35, %v5169_v12  ;;  %v4383_v57 = vld [vmem:[#allocation6 + $0x1d0] ss:$12 sps:$4 sm:$0xff]   ;;  %v432_v35 = vld [vmem:[#allocation2 + $0x38] sm:$0x1] }
  0xe9   : > { %3919 = vmatpush3.bf16.msra.mxu1 %v4368_v21  ;;  %2925 = vmatprep.mubr.bf16.mxu1 %v5070_v23  ;;  %v5233_v10 = vcombine.low %v465_v44, %v474_v29  ;;  %v477_v23 = vor.u32 %v5165_v11, %v5159_v6  ;;  %v585_v51 = vshrl.u32 %v5235_v8, 16  ;;  %v588_v21 = vshll.u32 %v5235_v8, 16  ;;  %v4384_v29 = vld [vmem:[#allocation6 + $0x420] ss:$12 sps:$4 sm:$0xff]  }
  0xea   : > { %2683 = vmatpush1.bf16.msra.mxu0 %v4364_v53  ;;  %v4373_v53 = vld [vmem:[#allocation6 + $0x1a0] ss:$12 sps:$4 sm:$0xff]   ;;  %3920 = vmatprep.subr.bf16.mxu1 %v4372_v56  ;;  %v3578_v11 = vrot.slane %v580_v60, 11  ;;  %v487_v41 = vrot.slane %v486_v1, 4  ;;  %v504_v1 = vor.u32 %v5218_v20, %v5214_v17 }
  0xeb   : > { %2684 = vmatprep.subr.bf16.mxu0 %v4371_v26  ;;  %2635 = vmatprep.mubr.bf16.mxu0 %v5225_v43  ;;  %v521_v26 = vld [vmem:[#allocation2 + $0x48] sm:$0x8]  ;;  %v587_v4 = vrot.slane %v585_v51, 7  ;;  %v478_v16 = vrot.slane %v477_v23, 4  ;;  %v4393_v17 = vld [vmem:[#allocation6 + $0x200] ss:$12 sps:$4 sm:$0xff]  }
  0xec   : > { %v593_v52 = vshrl.u32 %v521_v26, 16  ;;  %2636 = vmatmul.mubr.bf16.gmra.mrb[4].mxu0 %v5233_v10 }
  0xed   : > { %3921 = vmatpush3.bf16.msra.mxu1 %v4373_v53  ;;  %v590_v12 = vor.u32 %v588_v21, %v587_v4 }
  0xee   : > { %2685 = vmatpush1.bf16.msra.mxu0 %v4369_v50  ;;  %v5237_v50 = vld [vmem:[#allocation2 + $0x4c] sm:$0xf]  ;;  %3922 = vmatprep.subr.bf16.mxu1 %v4377_v40  ;;  %v3579_v9 = vrot.slane %v593_v52, 11  ;;  %v5263_v40 = vrot.slane %v549_v37, 5  ;;  %v4391_v37 = vld [vmem:[#allocation6 + $0x43c] ss:$12 sps:$4 sm:$0xff]  }
  0xef   : > { %2686 = vmatprep.subr.bf16.mxu0 %v4376_v38  ;;  %v598_v63 = vshrl.u32 %v5237_v50, 16  ;;  %v601_v19 = vshll.u32 %v5237_v50, 16  ;;  %v5250_v6 = vcombine.low %v5235_v8, %v5237_v50  ;;  %v433_v38 = vld [vmem:[#allocation2 + $0x44] sm:$0x1]  ;;  %v591_v44 = vsel %vm5013_vm5, %v3578_v11, %v590_v12  ;;  %v4447_v8 = vld [vmem:[#allocation6 + $0x548] ss:$12 sps:$4 sm:$0xff]  }
  0xf0   : > { %2926 = vmatmul.mubr.bf16.gmra.mrb[20].mxu1 %v5087_v49  ;;  %v489_v28 = vshll.u32 %v433_v38, 16  ;;  %v4434_v50 = vld [vmem:[#allocation6 + $0x510] ss:$12 sps:$4 sm:$0xff]  }
  0xf1   : > { %v600_v56 = vrot.slane %v598_v63, 7  ;;  %3923 = vmatpush3.bf16.msra.mxu1 %v4378_v55  ;;  %2933 = vmatprep.mubr.bf16.mxu1 %v5100_v61  ;;  %v495_v55 = vor.u32 %v5210_v15, %v5198_v47  ;;  %v294_v61 = vld [vmem:[%s4946_s26 + $0x1c] sm:$0xf]  ;;  %v5285_v47 = vld [vmem:[#allocation2 + $0x58] sm:$0xf] }
  0xf2   : > { %2687 = vmatpush1.bf16.msra.mxu0 %v4374_v27  ;;  %v480_v27 = vshll.u32 %v432_v35, 16  ;;  %3924 = vmatprep.subr.bf16.mxu1 %v4382_v62  ;;  %v491_v26 = vrot.slane %v489_v28, 5  ;;  %v523_v62 = vld [vmem:[#allocation2 + $0x54] sm:$0x8]  ;;  %304 = vst.msk [vmem:[#allocation2 + $0x64] sm:$0xf] %vm296_vm0, %v294_v61 }
  0xf3   : > { %2688 = vmatprep.subr.bf16.mxu0 %v4381_v30  ;;  %v603_v53 = vor.u32 %v601_v19, %v600_v56  ;;  %v4387_v30 = vld [vmem:[#allocation6 + $0x2a8] ss:$12 sps:$4 sm:$0xff]   ;;  %v606_v4 = vshrl.u32 %v523_v62, 16  ;;  %v611_v56 = vshrl.u32 %v5285_v47, 16  ;;  %v614_v20 = vshll.u32 %v5285_v47, 16 }
  0xf4   : > { %v482_v32 = vrot.slane %v480_v27, 5  ;;  %v492_v52 = vsel %vm5023_vm6, %v487_v41, %v491_v26  ;;  %v525_v15 = vld [vmem:[#allocation2 + $0x60] sm:$0x8]  ;;  %v505_v27 = vrot.slane %v504_v1, 4  ;;  %v434_v41 = vld [vmem:[#allocation2 + $0x50] sm:$0x1] }
  0xf5   : > { %v604_v49 = vsel %vm5013_vm5, %v3579_v9, %v603_v53  ;;  %3925 = vmatpush3.bf16.msra.mxu1 %v4383_v57  ;;  %v4392_v9 = vld [vmem:[#allocation6 + $0x2c0] ss:$12 sps:$4 sm:$0xff]   ;;  %v496_v57 = vrot.slane %v495_v55, 4  ;;  %v3580_v12 = vrot.slane %v606_v4, 11  ;;  %v613_v35 = vrot.slane %v611_v56, 7 }
  0xf6   : > { %2689 = vmatpush1.bf16.msra.mxu0 %v4379_v54  ;;  %v5270_v23 = vcombine.low %v591_v44, %v604_v49  ;;  %v483_v60 = vsel %vm5023_vm6, %v478_v16, %v482_v32  ;;  %v4388_v54 = vld [vmem:[#allocation6 + $0x1e8] ss:$12 sps:$4 sm:$0xff]   ;;  %3926 = vmatprep.subr.bf16.mxu1 %v4387_v30  ;;  %v619_v38 = vshrl.u32 %v525_v15, 16  ;;  %v4394_v53 = vld [vmem:[#allocation6 + $0x450] ss:$12 sps:$4 sm:$0xff]   ;;  %v648_v32 = vrot.slane %v546_v36, 4 }
  0xf7   : > { %2690 = vmatprep.subr.bf16.mxu0 %v4386_v5  ;;  %v5282_v11 = vcombine.low %v483_v60, %v492_v52  ;;  %v4389_v5 = vld [vmem:[#allocation6 + $0x438] ss:$12 sps:$4 sm:$0xff]   ;;  %v4396_v16 = vld [vmem:[#allocation6 + $0x454] ss:$12 sps:$4 sm:$0xff]   ;;  %v4403_v1 = vld [vmem:[#allocation6 + $0x230] ss:$12 sps:$4 sm:$0xff]  }
  0xf8   : > { %2645 = vmatprep.mubr.bf16.mxu0 %v5270_v23  ;;  %2934 = vmatmul.mubr.bf16.gmra.mrb[24].mxu1 %v5135_v33  ;;  %v435_v28 = vld [vmem:[#allocation2 + $0x5c] sm:$0x1]  ;;  %v639_v33 = vrot.slane %v533_v22, 4  ;;  %v4399_v60 = vld [vmem:[#allocation6 + $0x468] ss:$12 sps:$4 sm:$0xff]   ;;  %v650_v22 = vor.u32 %v5263_v40, %v648_v32  ;;  %v3581_v36 = vrot.slane %v619_v38, 11 }
  0xf9   : > { %2646 = vmatmul.mubr.bf16.gmra.mrb[8].mxu0 %v5282_v11  ;;  %3927 = vmatpush3.bf16.msra.mxu1 %v4388_v54  ;;  %v4397_v44 = vld [vmem:[#allocation6 + $0x2d8] ss:$12 sps:$4 sm:$0xff]   ;;  %v507_v30 = vshll.u32 %v435_v28, 16  ;;  %v5298_v26 = vld [vmem:[#allocation2 + $0x64] sm:$0xf] }
  0xfa   : > { %2691 = vmatpush1.bf16.msra.mxu0 %v4384_v29  ;;  %2941 = vmatprep.mubr.bf16.mxu1 %v5148_v45  ;;  %v498_v29 = vshll.u32 %v434_v41, 16  ;;  %v4398_v49 = vld [vmem:[#allocation6 + $0x218] ss:$12 sps:$4 sm:$0xff]   ;;  %v616_v45 = vor.u32 %v614_v20, %v613_v35  ;;  %v624_v54 = vshrl.u32 %v5298_v26, 16  ;;  %v627_v61 = vshll.u32 %v5298_v26, 16 }
  0xfb   : > { %2692 = vmatprep.subr.bf16.mxu0 %v4391_v37  ;;  %3928 = vmatprep.subr.bf16.mxu1 %v4392_v9  ;;  %v509_v55 = vrot.slane %v507_v30, 5  ;;  %v4401_v52 = vld [vmem:[#allocation6 + $0x46c] ss:$12 sps:$4 sm:$0xff]   ;;  %v641_v14 = vor.u32 %v5113_v13, %v639_v33  ;;  %v631_v15 = vld [vmem:[#allocation2 + $0x14] sm:$0x1]  ;;  %v651_v35 = vrot.slane %v650_v22, 4 }
  0xfc   : > { %v500_v37 = vrot.slane %v498_v29, 5  ;;  %v626_v62 = vrot.slane %v624_v54, 7  ;;  %v644_v9 = vshll.u32 %v631_v15, 16  ;;  %v4406_v38 = vld [vmem:[#allocation6 + $0x484] ss:$12 sps:$4 sm:$0xff]   ;;  %v657_v22 = vrot.slane %v559_v34, 4 }
  0xfd   : > { %3929 = vmatpush3.bf16.msra.mxu1 %v4393_v17  ;;  %v510_v13 = vsel %vm5023_vm6, %v505_v27, %v509_v55  ;;  %v642_v40 = vrot.slane %v641_v14, 4  ;;  %v617_v17 = vsel %vm5013_vm5, %v3580_v12, %v616_v45  ;;  %v4407_v12 = vld [vmem:[#allocation6 + $0x3c8] ss:$12 sps:$4 sm:$0xff]   ;;  %v4413_v33 = vld [vmem:[#allocation6 + $0x320] ss:$12 sps:$4 sm:$0xff]  }
  0xfe   : > { %2693 = vmatpush1.bf16.msra.mxu0 %v4389_v5  ;;  %3930 = vmatprep.subr.bf16.mxu1 %v4397_v44  ;;  %v501_v4 = vsel %vm5023_vm6, %v496_v57, %v500_v37  ;;  %v632_v5 = vld [vmem:[#allocation2 + $0x20] sm:$0x1]  ;;  %v646_v57 = vrot.slane %v644_v9, 5  ;;  %v4417_v32 = vld [vmem:[#allocation6 + $0x3f8] ss:$12 sps:$4 sm:$0xff]  }
  0xff   : > { %2694 = vmatprep.subr.bf16.mxu0 %v4396_v16  ;;  %v629_v16 = vor.u32 %v627_v61, %v626_v62  ;;  %v5320_v27 = vcombine.low %v501_v4, %v510_v13  ;;  %v4408_v29 = vld [vmem:[#allocation6 + $0x308] ss:$12 sps:$4 sm:$0xff]   ;;  %v4404_v45 = vld [vmem:[#allocation6 + $0x480] ss:$12 sps:$4 sm:$0xff]   ;;  %v4418_v55 = vld [vmem:[#allocation6 + $0x338] ss:$12 sps:$4 sm:$0xff]  }
 0x100   : > { %2942 = vmatmul.mubr.bf16.gmra.mrb[28].mxu1 %v5175_v18  ;;  %v653_v18 = vshll.u32 %v632_v5, 16  ;;  %v647_v44 = vsel %vm5023_vm6, %v642_v40, %v646_v57  ;;  %v4411_v37 = vld [vmem:[#allocation6 + $0x49c] ss:$12 sps:$4 sm:$0xff]   ;;  %v4416_v14 = vld [vmem:[#allocation6 + $0x4b4] ss:$12 sps:$4 sm:$0xff]   ;;  %v666_v4 = vrot.slane %v572_v25, 4 }
 0x101   : > { %3931 = vmatpush3.bf16.msra.mxu1 %v4398_v49  ;;  %2982 = vmatprep.mubr.bf16.mxu1 %v5052_v3  ;;  %v4412_v49 = vld [vmem:[#allocation6 + $0x3e0] ss:$12 sps:$4 sm:$0xff]   ;;  %v4426_v13 = vld [vmem:[#allocation6 + $0x4e4] ss:$12 sps:$4 sm:$0xff]   ;;  %v4431_v40 = vld [vmem:[#allocation6 + $0x4fc] ss:$12 sps:$4 sm:$0xff]  }
 0x102   : > { %2695 = vmatpush1.bf16.msra.mxu0 %v4394_v53  ;;  %3932 = vmatprep.subr.bf16.mxu1 %v4402_v24  ;;  %v630_v53 = vsel %vm5013_vm5, %v3581_v36, %v629_v16  ;;  %v655_v41 = vrot.slane %v653_v18, 5  ;;  %v658_v24 = vrot.slane %v562_v58, 5  ;;  %v4414_v36 = vld [vmem:[#allocation6 + $0x4b0] ss:$12 sps:$4 sm:$0xff]   ;;  %v4421_v62 = vld [vmem:[#allocation6 + $0x4cc] ss:$12 sps:$4 sm:$0xff]  }
 0x103   : > { %2696 = vmatprep.subr.bf16.mxu0 %v4401_v52  ;;  %v3605_v28 = vcombine.low %v617_v17, %v630_v53  ;;  %v4409_v52 = vld [vmem:[#allocation6 + $0x498] ss:$12 sps:$4 sm:$0xff]   ;;  %v4433_v34 = vld [vmem:[#allocation6 + $0x380] ss:$12 sps:$4 sm:$0xff]   ;;  %v675_v25 = vrot.slane %v585_v51, 4  ;;  %v676_v17 = vrot.slane %v588_v21, 5 }
 0x104   : > { %v656_v3 = vsel %vm5023_vm6, %v651_v35, %v655_v41  ;;  %v659_v15 = vor.u32 %v658_v24, %v657_v22  ;;  %v4424_v58 = vld [vmem:[#allocation6 + $0x4e0] ss:$12 sps:$4 sm:$0xff]   ;;  %v4437_v5 = vld [vmem:[#allocation6 + $0x458] ss:$12 sps:$4 sm:$0xff]   ;;  %v684_v16 = vrot.slane %v598_v63, 4  ;;  %v685_v35 = vrot.slane %v601_v19, 5 }
 0x105   : > { %3933 = vmatpush3.bf16.msra.mxu1 %v4403_v1  ;;  %2655 = vmatprep.mubr.bf16.mxu0 %v3605_v28  ;;  %v5326_v30 = vcombine.low %v647_v44, %v656_v3  ;;  %v4428_v1 = vld [vmem:[#allocation6 + $0x368] ss:$12 sps:$4 sm:$0xff]   ;;  %v4429_v18 = vld [vmem:[#allocation6 + $0x4f8] ss:$12 sps:$4 sm:$0xff]   ;;  %v4443_v51 = vld [vmem:[#allocation6 + $0x3b0] ss:$12 sps:$4 sm:$0xff]   ;;  %v677_v63 = vor.u32 %v676_v17, %v675_v25 }
 0x106   : > { %2697 = vmatpush1.bf16.msra.mxu0 %v4399_v60  ;;  %3958 = vmatprep.subr.bf16.mxu1 %v4407_v12  ;;  %v4422_v60 = vld [vmem:[#allocation6 + $0x410] ss:$12 sps:$4 sm:$0xff]   ;;  %v660_v9 = vrot.slane %v659_v15, 4  ;;  %v633_v21 = vld [vmem:[#allocation2 + $0x2c] sm:$0x1]  ;;  %v686_v12 = vor.u32 %v685_v35, %v684_v16 }
 0x107   : > { %2739 = vmatprep.subr.bf16.mxu0 %v4406_v38  ;;  %2656 = vmatmul.mubr.bf16.gmra.mrb[12].mxu0 %v5320_v27  ;;  %v4436_v38 = vld [vmem:[#allocation6 + $0x514] ss:$12 sps:$4 sm:$0xff]   ;;  %v662_v53 = vshll.u32 %v633_v21, 16  ;;  %v4441_v19 = vld [vmem:[#allocation6 + $0x52c] ss:$12 sps:$4 sm:$0xff]  }
 0x108   : > { %2698 = vmatprep.mubr.bf16.mxu0 %v5326_v30  ;;  %2983 = vmatmul.mubr.bf16.vlgmr.msra.gmra.mrb[32].mxu1 %v5057_v7  ;;  %v4423_v7 = vld [vmem:[#allocation6 + $0x350] ss:$12 sps:$4 sm:$0xff]   ;;  %v634_v57 = vld [vmem:[#allocation2 + $0x38] sm:$0x1]  ;;  %v4457_v24 = vld [vmem:[#allocation6 + $0x578] ss:$12 sps:$4 sm:$0xff]  }
 0x109   : > { %3959 = vmatpush3.bf16.msra.mxu1 %v4408_v29  ;;  %2990 = vmatprep.mubr.bf16.mxu1 %v5225_v43  ;;  %v4427_v43 = vld [vmem:[#allocation6 + $0x428] ss:$12 sps:$4 sm:$0xff]   ;;  %v664_v44 = vrot.slane %v662_v53, 5  ;;  %v4444_v22 = vld [vmem:[#allocation6 + $0x540] ss:$12 sps:$4 sm:$0xff]  }
 0x10a   : > { %3960 = vmatprep.subr.bf16.mxu1 %v4412_v49  ;;  %v4439_v29 = vld [vmem:[#allocation6 + $0x528] ss:$12 sps:$4 sm:$0xff]   ;;  %v4452_v49 = vld [vmem:[#allocation6 + $0x560] ss:$12 sps:$4 sm:$0xff]   ;;  %v4454_v35 = vld [vmem:[#allocation6 + $0x570] ss:$12 sps:$4 sm:$0xff]  }
 0x10b   : > { %v4472_v21 = vld [vmem:[#allocation6 + $0x5c0] ss:$12 sps:$4 sm:$0xff]   ;;  %v4466_v53 = vld [vmem:[#allocation6 + $0x5a4] ss:$12 sps:$4 sm:$0xff]  }
 0x10d   : > { %3961 = vmatpush3.bf16.msra.mxu1 %v4413_v33  ;;  %v678_v33 = vrot.slane %v677_v63, 4  ;;  %v3609_v63 = vcombine.low %v5285_v47, %v5298_v26  ;;  %v4478_v47 = vld [vmem:[#allocation6 + $0x5d8] ss:$12 sps:$4 sm:$0xff]   ;;  %v714_v26 = vld [vmem:[#allocation2 + $0x24] sm:$0x8] }
 0x10e   : > { %3962 = vmatprep.subr.bf16.mxu1 %v4417_v32  ;;  %v687_v32 = vrot.slane %v686_v12, 4  ;;  %v4473_v12 = vld [vmem:[#allocation6 + $0x500] ss:$12 sps:$4 sm:$0xff]  }
 0x10f   : > { %2699 = vmatmul.mubr.bf16.vlgmr.msra.gmra.mrb[0].mxu0 %v5029_v48 }
 0x110   : > { %2740 = vmatpush1.bf16.msra.mxu0 %v4404_v45  ;;  %2991 = vmatmul.mubr.bf16.gmra.mrb[36].mxu1 %v5233_v10  ;;  %v4432_v10 = vld [vmem:[#allocation6 + $0x440] ss:$12 sps:$4 sm:$0xff]   ;;  %v4446_v45 = vld [vmem:[#allocation6 + $0x544] ss:$12 sps:$4 sm:$0xff]  }
 0x111   : > { %2741 = vmatprep.subr.bf16.mxu0 %v4411_v37  ;;  %3963 = vmatpush3.bf16.msra.mxu1 %v4418_v55 }
 0x112   : > { %3964 = vmatprep.subr.bf16.mxu1 %v4422_v60  ;;  %2998 = vmatprep.mubr.bf16.mxu1 %v5270_v23  ;;  %v4419_v23 = vld [vmem:[#allocation6 + $0x4c8] ss:$12 sps:$4 sm:$0xff]   ;;  %v693_v60 = vrot.slane %v611_v56, 4 }
 0x113   : > { %v4451_v56 = vld [vmem:[#allocation6 + $0x55c] ss:$12 sps:$4 sm:$0xff]  }
 0x114   : > { %2742 = vmatpush1.bf16.msra.mxu0 %v4409_v52  ;;  %v694_v52 = vrot.slane %v614_v20, 5 }
 0x115   : > { %2743 = vmatprep.subr.bf16.mxu0 %v4416_v14  ;;  %3965 = vmatpush3.bf16.msra.mxu1 %v4423_v7  ;;  %v4453_v14 = vld [vmem:[#allocation6 + $0x4a0] ss:$12 sps:$4 sm:$0xff]  }
 0x116   : > { %3966 = vmatprep.subr.bf16.mxu1 %v4427_v43  ;;  %v635_v7 = vld [vmem:[#allocation2 + $0x44] sm:$0x1]  ;;  %v636_v43 = vld [vmem:[#allocation2 + $0x50] sm:$0x1]  ;;  %v695_v15 = vor.u32 %v694_v52, %v693_v60 }
 0x117   : > { %v4479_v60 = vld [vmem:[#allocation6 + $0x518] ss:$12 sps:$4 sm:$0xff]  }
 0x118   : > { %2744 = vmatpush1.bf16.msra.mxu0 %v4414_v36  ;;  %2999 = vmatmul.mubr.bf16.gmra.mrb[40].mxu1 %v5282_v11  ;;  %v668_v11 = vor.u32 %v667_v59, %v666_v4  ;;  %v680_v36 = vshll.u32 %v635_v7, 16  ;;  %v703_v4 = vrot.slane %v627_v61, 5  ;;  %v638_v61 = vld [vmem:[#allocation2 + $0x68] sm:$0x1]  ;;  %v696_v25 = vrot.slane %v695_v15, 4 }
 0x119   : > { %2745 = vmatprep.subr.bf16.mxu0 %v4421_v62  ;;  %3967 = vmatpush3.bf16.msra.mxu1 %v4428_v1  ;;  %v689_v62 = vshll.u32 %v636_v43, 16  ;;  %v4469_v7 = vld [vmem:[#allocation6 + $0x5b8] ss:$12 sps:$4 sm:$0xff]   ;;  %v4483_v43 = vld [vmem:[#allocation6 + $0x5f0] ss:$12 sps:$4 sm:$0xff]  }
 0x11a   : > { %3968 = vmatprep.subr.bf16.mxu1 %v4432_v10  ;;  %3006 = vmatprep.mubr.bf16.mxu1 %v3605_v28  ;;  %v669_v41 = vrot.slane %v668_v11, 4  ;;  %v671_v28 = vshll.u32 %v634_v57, 16  ;;  %v682_v20 = vrot.slane %v680_v36, 5  ;;  %v4458_v10 = vld [vmem:[#allocation6 + $0x4b8] ss:$12 sps:$4 sm:$0xff]   ;;  %v707_v11 = vshll.u32 %v638_v61, 16 }
 0x11b   : > { %v691_v1 = vrot.slane %v689_v62, 5  ;;  %v4484_v36 = vld [vmem:[#allocation6 + $0x530] ss:$12 sps:$4 sm:$0xff]  }
 0x11c   : > { %2746 = vmatpush1.bf16.msra.mxu0 %v4419_v23  ;;  %v673_v3 = vrot.slane %v671_v28, 5  ;;  %v4449_v23 = vld [vmem:[#allocation6 + $0x558] ss:$12 sps:$4 sm:$0xff]   ;;  %v683_v59 = vsel %vm5023_vm6, %v678_v33, %v682_v20 }
 0x11d   : > { %2747 = vmatprep.subr.bf16.mxu0 %v4426_v13  ;;  %3969 = vmatpush3.bf16.msra.mxu1 %v4433_v34  ;;  %v4462_v13 = vld [vmem:[#allocation6 + $0x590] ss:$12 sps:$4 sm:$0xff]   ;;  %v4456_v34 = vld [vmem:[#allocation6 + $0x574] ss:$12 sps:$4 sm:$0xff]   ;;  %v716_v20 = vld [vmem:[#allocation2 + $0x30] sm:$0x8] }
 0x11e   : > { %3970 = vmatprep.subr.bf16.mxu1 %v4437_v5  ;;  %v674_v37 = vsel %vm5023_vm6, %v669_v41, %v673_v3 }
 0x120   : > { %2748 = vmatpush1.bf16.msra.mxu0 %v4424_v58  ;;  %3007 = vmatmul.mubr.bf16.gmra.mrb[44].mxu1 %v5320_v27  ;;  %v4448_v27 = vld [vmem:[#allocation6 + $0x488] ss:$12 sps:$4 sm:$0xff]  }
 0x121   : > { %2749 = vmatprep.subr.bf16.mxu0 %v4431_v40  ;;  %3971 = vmatpush3.bf16.msra.mxu1 %v4438_v31  ;;  %v4463_v40 = vld [vmem:[#allocation6 + $0x4d0] ss:$12 sps:$4 sm:$0xff]   ;;  %v4467_v31 = vld [vmem:[#allocation6 + $0x5a8] ss:$12 sps:$4 sm:$0xff]  }
 0x122   : > { %3972 = vmatprep.subr.bf16.mxu1 %v4442_v2  ;;  %3047 = vmatprep.mubr.bf16.mxu1 %v5326_v30  ;;  %v665_v30 = vsel %vm5023_vm6, %v660_v9, %v664_v44  ;;  %v637_v9 = vld [vmem:[#allocation2 + $0x5c] sm:$0x1] }
 0x123   : > { %v3611_v55 = vcombine.low %v665_v30, %v674_v37  ;;  %v698_v17 = vshll.u32 %v637_v9, 16  ;;  %v4464_v30 = vld [vmem:[#allocation6 + $0x5a0] ss:$12 sps:$4 sm:$0xff]  }
 0x124   : > { %2750 = vmatpush1.bf16.msra.mxu0 %v4429_v18  ;;  %v709_v18 = vrot.slane %v707_v11, 5  ;;  %v4482_v9 = vld [vmem:[#allocation6 + $0x5ec] ss:$12 sps:$4 sm:$0xff]  }
 0x125   : > { %2751 = vmatprep.subr.bf16.mxu0 %v4436_v38  ;;  %3973 = vmatpush3.bf16.msra.mxu1 %v4443_v51  ;;  %v700_v16 = vrot.slane %v698_v17, 5  ;;  %v4468_v38 = vld [vmem:[#allocation6 + $0x4e8] ss:$12 sps:$4 sm:$0xff]  }
 0x126   : > { %3998 = vmatprep.subr.bf16.mxu1 %v4447_v8  ;;  %2708 = vmatprep.mubr.bf16.mxu0 %v3611_v55  ;;  %v4459_v8 = vld [vmem:[#allocation6 + $0x588] ss:$12 sps:$4 sm:$0xff]  }
 0x127   : > { %2709 = vmatmul.mubr.bf16.gmra.mrb[4].mxu0 %v5196_v42  ;;  %v701_v51 = vsel %vm5023_vm6, %v696_v25, %v700_v16  ;;  %v4493_v16 = vld [vmem:[#allocation6 + $0x620] ss:$12 sps:$4 sm:$0xff]  }
 0x128   : > { %2752 = vmatpush1.bf16.msra.mxu0 %v4434_v50  ;;  %3048 = vmatmul.mubr.bf16.vlgmr.msra.gmra.mrb[48].mxu1 %v5029_v48  ;;  %v702_v48 = vrot.slane %v624_v54, 4  ;;  %v692_v54 = vsel %vm5023_vm6, %v687_v32, %v691_v1  ;;  %v5381_v50 = vld [vmem:[#allocation2 + $0x1c] sm:$0xf] }
 0x129   : > { %2753 = vmatprep.subr.bf16.mxu0 %v4441_v19  ;;  %3999 = vmatpush3.bf16.msra.mxu1 %v4448_v27  ;;  %v3612_v58 = vcombine.low %v683_v59, %v692_v54  ;;  %v5383_v19 = vld [vmem:[#allocation2 + $0x28] sm:$0xf]  ;;  %v734_v28 = vshrl.u32 %v5381_v50, 16  ;;  %v737_v44 = vshll.u32 %v5381_v50, 16  ;;  %v755_v54 = vshrl.u32 %v716_v20, 16 }
 0x12a   : > { %4000 = vmatprep.subr.bf16.mxu1 %v4452_v49  ;;  %3055 = vmatprep.mubr.bf16.mxu1 %v3611_v55  ;;  %v704_v5 = vor.u32 %v703_v4, %v702_v48  ;;  %v747_v27 = vshrl.u32 %v5383_v19, 16  ;;  %v750_v3 = vshll.u32 %v5383_v19, 16  ;;  %v742_v55 = vshrl.u32 %v714_v26, 16  ;;  %v717_v48 = vld [vmem:[#allocation2 + $0x34] sm:$0xf] }
 0x12b   : > { %2718 = vmatprep.mubr.bf16.mxu0 %v3612_v58  ;;  %v736_v33 = vrot.slane %v734_v28, 7  ;;  %v763_v15 = vshll.u32 %v717_v48, 16  ;;  %v5399_v25 = vrot.slane %v734_v28, 4  ;;  %v3584_v17 = vrot.slane %v755_v54, 11  ;;  %v5433_v20 = vld [vmem:[#allocation2 + $0x64] sm:$0xf] }
 0x12c   : > { %2754 = vmatpush1.bf16.msra.mxu0 %v4439_v29  ;;  %v705_v2 = vrot.slane %v704_v5, 4  ;;  %v712_v29 = vld [vmem:[#allocation2 + $0x18] sm:$0x8]  ;;  %v749_v32 = vrot.slane %v747_v27, 7  ;;  %v5401_v11 = vrot.slane %v737_v44, 5 }
 0x12d   : > { %2755 = vmatprep.subr.bf16.mxu0 %v4446_v45  ;;  %4001 = vmatpush3.bf16.msra.mxu1 %v4453_v14  ;;  %v729_v49 = vshrl.u32 %v712_v29, 16  ;;  %v4471_v45 = vld [vmem:[#allocation6 + $0x5bc] ss:$12 sps:$4 sm:$0xff]   ;;  %v739_v52 = vor.u32 %v737_v44, %v736_v33  ;;  %v4486_v29 = vld [vmem:[#allocation6 + $0x600] ss:$12 sps:$4 sm:$0xff]  }
 0x12e   : > { %4002 = vmatprep.subr.bf16.mxu1 %v4457_v24  ;;  %v710_v57 = vsel %vm5023_vm6, %v705_v2, %v709_v18  ;;  %v752_v14 = vor.u32 %v750_v3, %v749_v32  ;;  %v4477_v24 = vld [vmem:[#allocation6 + $0x5d4] ss:$12 sps:$4 sm:$0xff]   ;;  %v4495_v54 = vld [vmem:[#allocation6 + $0x630] ss:$12 sps:$4 sm:$0xff]  }
 0x12f   : > { %2719 = vmatmul.mubr.bf16.gmra.mrb[8].mxu0 %v5250_v6  ;;  %v3613_v41 = vcombine.low %v701_v51, %v710_v57  ;;  %v3582_v37 = vrot.slane %v729_v49, 11  ;;  %v4480_v2 = vld [vmem:[#allocation6 + $0x5e8] ss:$12 sps:$4 sm:$0xff]   ;;  %v4488_v51 = vld [vmem:[#allocation6 + $0x604] ss:$12 sps:$4 sm:$0xff]  }
 0x130   : > { %2756 = vmatpush1.bf16.msra.mxu0 %v4444_v22  ;;  %3056 = vmatmul.mubr.bf16.gmra.mrb[52].mxu1 %v5196_v42  ;;  %v4461_v42 = vld [vmem:[#allocation6 + $0x58c] ss:$12 sps:$4 sm:$0xff]   ;;  %v3583_v22 = vrot.slane %v742_v55, 11  ;;  %v5411_v57 = vld [vmem:[#allocation2 + $0x4c] sm:$0xf] }
 0x131   : > { %2757 = vmatprep.subr.bf16.mxu0 %v4451_v56  ;;  %4003 = vmatpush3.bf16.msra.mxu1 %v4458_v10  ;;  %v740_v62 = vsel %vm5013_vm5, %v3582_v37, %v739_v52  ;;  %v719_v56 = vld [vmem:[#allocation2 + $0x40] sm:$0xf]  ;;  %v760_v10 = vshrl.u32 %v717_v48, 16 }
 0x132   : > { %4004 = vmatprep.subr.bf16.mxu1 %v4462_v13  ;;  %3063 = vmatprep.mubr.bf16.mxu1 %v3612_v58  ;;  %v753_v1 = vsel %vm5013_vm5, %v3583_v22, %v752_v14  ;;  %v773_v4 = vshrl.u32 %v719_v56, 16  ;;  %v4489_v13 = vld [vmem:[#allocation6 + $0x608] ss:$12 sps:$4 sm:$0xff]   ;;  %v776_v59 = vshll.u32 %v719_v56, 16  ;;  %v4490_v14 = vld [vmem:[#allocation6 + $0x618] ss:$12 sps:$4 sm:$0xff]  }
 0x133   : > { %2728 = vmatprep.mubr.bf16.mxu0 %v3613_v41  ;;  %v762_v58 = vrot.slane %v760_v10, 7  ;;  %v3614_v61 = vcombine.low %v740_v62, %v753_v1  ;;  %v4497_v22 = vld [vmem:[#allocation6 + $0x634] ss:$12 sps:$4 sm:$0xff]   ;;  %v5435_v1 = vld [vmem:[#allocation2 + $0x70] sm:$0xf] }
 0x134   : > { %2758 = vmatpush1.bf16.msra.mxu0 %v4449_v23  ;;  %v718_v23 = vld [vmem:[#allocation2 + $0x3c] sm:$0x8]  ;;  %v775_v5 = vrot.slane %v773_v4, 7  ;;  %v867_v33 = vrot.slane %v773_v4, 4  ;;  %v868_v32 = vrot.slane %v776_v59, 5 }
 0x135   : > { %2759 = vmatprep.subr.bf16.mxu0 %v4456_v34  ;;  %4005 = vmatpush3.bf16.msra.mxu1 %v4463_v40  ;;  %v768_v34 = vshrl.u32 %v718_v23, 16  ;;  %v4475_v40 = vld [vmem:[#allocation6 + $0x5d0] ss:$12 sps:$4 sm:$0xff]   ;;  %v812_v23 = vshrl.u32 %v5433_v20, 16 }
 0x136   : > { %4006 = vmatprep.subr.bf16.mxu1 %v4467_v31  ;;  %v765_v31 = vor.u32 %v763_v15, %v762_v58  ;;  %v828_v58 = vshll.u32 %v5435_v1, 16 }
 0x137   : > { %2729 = vmatmul.mubr.bf16.gmra.mrb[12].mxu0 %v3609_v63  ;;  %v3585_v18 = vrot.slane %v768_v34, 11  ;;  %v815_v34 = vshll.u32 %v5433_v20, 16 }
 0x138   : > { %2760 = vmatpush1.bf16.msra.mxu0 %v4454_v35  ;;  %3064 = vmatmul.mubr.bf16.gmra.mrb[56].mxu1 %v5250_v6  ;;  %v3618_v6 = vcombine.low %v5381_v50, %v5383_v19  ;;  %v3619_v35 = vcombine.low %v717_v48, %v719_v56  ;;  %v720_v50 = vld [vmem:[#allocation2 + $0x48] sm:$0x8]  ;;  %v869_v56 = vor.u32 %v868_v32, %v867_v33  ;;  %v836_v32 = vld [vmem:[#allocation2 + $0x50] sm:$0x1] }
 0x139   : > { %2761 = vmatprep.subr.bf16.mxu0 %v4461_v42  ;;  %4007 = vmatpush3.bf16.msra.mxu1 %v4468_v38  ;;  %v778_v42 = vor.u32 %v776_v59, %v775_v5  ;;  %v5405_v38 = vrot.slane %v747_v27, 4  ;;  %v722_v27 = vld [vmem:[#allocation2 + $0x54] sm:$0x8]  ;;  %v726_v59 = vld [vmem:[#allocation2 + $0x6c] sm:$0x8] }
 0x13a   : > { %4008 = vmatprep.subr.bf16.mxu1 %v4472_v21  ;;  %3071 = vmatprep.mubr.bf16.mxu1 %v3613_v41  ;;  %v4498_v21 = vld [vmem:[#allocation6 + $0x638] ss:$12 sps:$4 sm:$0xff]   ;;  %v5415_v41 = vld [vmem:[#allocation2 + $0x58] sm:$0xf]  ;;  %v794_v49 = vshrl.u32 %v722_v27, 16 }
 0x13b   : > { %2771 = vmatprep.mubr.bf16.mxu0 %v3618_v6  ;;  %v779_v19 = vsel %vm5013_vm5, %v3585_v18, %v778_v42  ;;  %v799_v28 = vshrl.u32 %v5415_v41, 16  ;;  %v802_v44 = vshll.u32 %v5415_v41, 16  ;;  %v4511_v27 = vld [vmem:[#allocation6 + $0x680] ss:$12 sps:$4 sm:$0xff]  }
 0x13c   : > { %2762 = vmatpush1.bf16.msra.mxu0 %v4459_v8  ;;  %v5409_v8 = vrot.slane %v750_v3, 5  ;;  %v781_v3 = vshrl.u32 %v720_v50, 16  ;;  %v3587_v52 = vrot.slane %v794_v49, 11 }
 0x13d   : > { %2763 = vmatprep.subr.bf16.mxu0 %v4466_v53  ;;  %4009 = vmatpush3.bf16.msra.mxu1 %v4473_v12  ;;  %v766_v53 = vsel %vm5013_vm5, %v3584_v17, %v765_v31  ;;  %v789_v12 = vshll.u32 %v5411_v57, 16  ;;  %v885_v42 = vrot.slane %v799_v28, 4 }
 0x13e   : > { %4010 = vmatprep.subr.bf16.mxu1 %v4478_v47  ;;  %v858_v47 = vrot.slane %v760_v10, 4  ;;  %v3586_v37 = vrot.slane %v781_v3, 11  ;;  %v3615_v55 = vcombine.low %v766_v53, %v779_v19  ;;  %v851_v62 = vor.u32 %v5409_v8, %v5405_v38  ;;  %v724_v10 = vld [vmem:[#allocation2 + $0x60] sm:$0x8] }
 0x13f   : > { %v807_v5 = vshrl.u32 %v724_v10, 16  ;;  %v877_v18 = vrot.slane %v789_v12, 5  ;;  %v886_v38 = vrot.slane %v802_v44, 5  ;;  %v3621_v8 = vcombine.low %v5433_v20, %v5435_v1  ;;  %v4520_v10 = vld [vmem:[#allocation6 + $0x6b0] ss:$12 sps:$4 sm:$0xff]  }
 0x140   : > { %2764 = vmatpush1.bf16.msra.mxu0 %v4464_v30  ;;  %3072 = vmatmul.mubr.bf16.gmra.mrb[60].mxu1 %v3609_v63  ;;  %v786_v63 = vshrl.u32 %v5411_v57, 16  ;;  %v4492_v30 = vld [vmem:[#allocation6 + $0x61c] ss:$12 sps:$4 sm:$0xff]  }
 0x141   : > { %2765 = vmatprep.subr.bf16.mxu0 %v4471_v45  ;;  %4011 = vmatpush3.bf16.msra.mxu1 %v4479_v60  ;;  %v801_v45 = vrot.slane %v799_v28, 7  ;;  %v3588_v53 = vrot.slane %v807_v5, 11  ;;  %v4506_v28 = vld [vmem:[#allocation6 + $0x664] ss:$12 sps:$4 sm:$0xff]   ;;  %v4515_v5 = vld [vmem:[#allocation6 + $0x694] ss:$12 sps:$4 sm:$0xff]  }
 0x142   : > { %4012 = vmatprep.subr.bf16.mxu1 %v4483_v43  ;;  %3112 = vmatprep.mubr.bf16.mxu1 %v3618_v6  ;;  %v859_v6 = vrot.slane %v763_v15, 5  ;;  %v788_v26 = vrot.slane %v786_v63, 7 }
 0x143   : > { %v804_v43 = vor.u32 %v802_v44, %v801_v45  ;;  %v837_v45 = vld [vmem:[#allocation2 + $0x5c] sm:$0x1] }
 0x144   : > { %2766 = vmatpush1.bf16.msra.mxu0 %v4469_v7  ;;  %v791_v60 = vor.u32 %v789_v12, %v788_v26  ;;  %v3620_v7 = vcombine.low %v5411_v57, %v5415_v41  ;;  %v860_v48 = vor.u32 %v859_v6, %v858_v47  ;;  %v832_v57 = vld [vmem:[#allocation2 + $0x20] sm:$0x1]  ;;  %v834_v12 = vld [vmem:[#allocation2 + $0x38] sm:$0x1]  ;;  %v887_v6 = vor.u32 %v886_v38, %v885_v42  ;;  %v4519_v42 = vld [vmem:[#allocation6 + $0x6ac] ss:$12 sps:$4 sm:$0xff]  }
 0x145   : > { %2767 = vmatprep.subr.bf16.mxu0 %v4477_v24  ;;  %4013 = vmatpush3.bf16.msra.mxu1 %v4484_v36  ;;  %v4502_v24 = vld [vmem:[#allocation6 + $0x650] ss:$12 sps:$4 sm:$0xff]   ;;  %v842_v36 = vor.u32 %v5401_v11, %v5399_v25  ;;  %v805_v4 = vsel %vm5013_vm5, %v3587_v52, %v804_v43  ;;  %v814_v25 = vrot.slane %v812_v23, 7  ;;  %v845_v44 = vshll.u32 %v832_v57, 16 }
 0x146   : > { %4050 = vmatprep.subr.bf16.mxu1 %v4489_v13  ;;  %v792_v15 = vsel %vm5013_vm5, %v3586_v37, %v791_v60  ;;  %v5449_v11 = vrot.slane %v860_v48, 4  ;;  %v894_v37 = vrot.slane %v812_v23, 4  ;;  %v895_v43 = vrot.slane %v815_v34, 5 }
 0x147   : > { %v5447_v31 = vrot.slane %v842_v36, 4  ;;  %v817_v41 = vor.u32 %v815_v34, %v814_v25  ;;  %v847_v60 = vrot.slane %v845_v44, 5  ;;  %v890_v36 = vshll.u32 %v837_v45, 16  ;;  %v839_v34 = vld [vmem:[#allocation2 + $0x74] sm:$0x1] }
 0x148   : > { %2768 = vmatpush1.bf16.msra.mxu0 %v4475_v40  ;;  %3113 = vmatmul.mubr.bf16.vlgmr.msra.gmra.mrb[64].mxu1 %v3614_v61  ;;  %v820_v40 = vshrl.u32 %v726_v59, 16 }
 0x149   : > { %2769 = vmatprep.subr.bf16.mxu0 %v4482_v9  ;;  %4051 = vmatpush3.bf16.msra.mxu1 %v4489_v13  ;;  %v825_v13 = vshrl.u32 %v5435_v1, 16  ;;  %v4501_v9 = vld [vmem:[#allocation6 + $0x64c] ss:$12 sps:$4 sm:$0xff]   ;;  %v818_v26 = vsel %vm5013_vm5, %v3588_v53, %v817_v41  ;;  %v848_v48 = vsel %vm5023_vm6, %v5447_v31, %v847_v60  ;;  %v888_v1 = vrot.slane %v887_v6, 4  ;;  %v4517_v53 = vld [vmem:[#allocation6 + $0x6a8] ss:$12 sps:$4 sm:$0xff]  }
 0x14a   : > { %4052 = vmatprep.subr.bf16.mxu1 %v4493_v16  ;;  %3120 = vmatprep.mubr.bf16.mxu1 %v3619_v35  ;;  %v3589_v50 = vrot.slane %v820_v40, 11  ;;  %v892_v59 = vrot.slane %v890_v36, 5  ;;  %v896_v40 = vor.u32 %v895_v43, %v894_v37  ;;  %v908_v31 = vshll.u32 %v839_v34, 16 }
 0x14b   : > { %v827_v17 = vrot.slane %v825_v13, 7 }
 0x14c   : > { %2770 = vmatpush1.bf16.msra.mxu0 %v4480_v2  ;;  %v852_v2 = vrot.slane %v851_v62, 4 }
 0x14d   : > { %2812 = vmatprep.subr.bf16.mxu0 %v4488_v51  ;;  %4053 = vmatpush3.bf16.msra.mxu1 %v4493_v16  ;;  %v5451_v16 = vrot.slane %v869_v56, 4  ;;  %v3616_v51 = vcombine.low %v792_v15, %v805_v4  ;;  %v830_v19 = vor.u32 %v828_v58, %v827_v17 }
 0x14e   : > { %4054 = vmatprep.subr.bf16.mxu1 %v4498_v21 }
 0x14f   : > { %2772 = vmatmul.mubr.bf16.vlgmr.msra.gmra.mrb[0].mxu0 %v3614_v61  ;;  %v4507_v61 = vld [vmem:[#allocation6 + $0x668] ss:$12 sps:$4 sm:$0xff]   ;;  %v831_v49 = vsel %vm5013_vm5, %v3589_v50, %v830_v19 }
 0x150   : > { %2813 = vmatpush1.bf16.msra.mxu0 %v4486_v29  ;;  %2781 = vmatprep.mubr.bf16.mxu0 %v3619_v35  ;;  %v876_v35 = vrot.slane %v786_v63, 4  ;;  %v833_v63 = vld [vmem:[#allocation2 + $0x2c] sm:$0x1]  ;;  %v835_v29 = vld [vmem:[#allocation2 + $0x44] sm:$0x1]  ;;  %v3617_v62 = vcombine.low %v818_v26, %v831_v49 }
 0x151   : > { %2814 = vmatprep.subr.bf16.mxu0 %v4492_v30  ;;  %3121 = vmatmul.mubr.bf16.gmra.mrb[68].mxu1 %v3615_v55  ;;  %v854_v3 = vshll.u32 %v833_v63, 16  ;;  %v863_v30 = vshll.u32 %v834_v12, 16  ;;  %v872_v33 = vshll.u32 %v835_v29, 16 }
 0x152   : > { %4055 = vmatpush3.bf16.msra.mxu1 %v4498_v21  ;;  %3128 = vmatprep.mubr.bf16.mxu1 %v3620_v7  ;;  %v4499_v21 = vld [vmem:[#allocation6 + $0x648] ss:$12 sps:$4 sm:$0xff]   ;;  %v878_v47 = vor.u32 %v877_v18, %v876_v35  ;;  %v893_v35 = vsel %vm5023_vm6, %v888_v1, %v892_v59  ;;  %v4513_v18 = vld [vmem:[#allocation6 + $0x690] ss:$12 sps:$4 sm:$0xff]  }
 0x153   : > { %4056 = vmatprep.subr.bf16.mxu1 %v4502_v24  ;;  %v856_v52 = vrot.slane %v854_v3, 5  ;;  %v865_v4 = vrot.slane %v863_v30, 5  ;;  %v874_v23 = vrot.slane %v872_v33, 5 }
 0x154   : > { %2815 = vmatpush1.bf16.msra.mxu0 %v4490_v14  ;;  %v881_v14 = vshll.u32 %v836_v32, 16  ;;  %v879_v20 = vrot.slane %v878_v47, 4 }
 0x155   : > { %2816 = vmatprep.subr.bf16.mxu0 %v4497_v22  ;;  %v903_v22 = vrot.slane %v825_v13, 4  ;;  %v857_v56 = vsel %vm5023_vm6, %v852_v2, %v856_v52  ;;  %v875_v25 = vsel %vm5023_vm6, %v5451_v16, %v874_v23  ;;  %v910_v16 = vrot.slane %v908_v31, 5 }
 0x156   : > { %4057 = vmatpush3.bf16.msra.mxu1 %v4502_v24  ;;  %v904_v24 = vrot.slane %v828_v58, 5  ;;  %v3622_v15 = vcombine.low %v848_v48, %v857_v56  ;;  %v883_v13 = vrot.slane %v881_v14, 5  ;;  %v4508_v58 = vld [vmem:[#allocation6 + $0x678] ss:$12 sps:$4 sm:$0xff]  }
 0x157   : > { %2782 = vmatmul.mubr.bf16.gmra.mrb[4].mxu0 %v3615_v55  ;;  %4058 = vmatprep.subr.bf16.mxu1 %v4507_v61  ;;  %v4516_v55 = vld [vmem:[#allocation6 + $0x698] ss:$12 sps:$4 sm:$0xff]  }
 0x158   : > { %2817 = vmatpush1.bf16.msra.mxu0 %v4495_v54  ;;  %2791 = vmatprep.mubr.bf16.mxu0 %v3620_v7  ;;  %v4504_v7 = vld [vmem:[#allocation6 + $0x660] ss:$12 sps:$4 sm:$0xff]   ;;  %v838_v54 = vld [vmem:[#allocation2 + $0x68] sm:$0x1]  ;;  %v884_v2 = vsel %vm5023_vm6, %v879_v20, %v883_v13 }
 0x159   : > { %2818 = vmatprep.subr.bf16.mxu0 %v4501_v9  ;;  %3129 = vmatmul.mubr.bf16.gmra.mrb[72].mxu1 %v3616_v51  ;;  %v905_v9 = vor.u32 %v904_v24, %v903_v22  ;;  %v899_v17 = vshll.u32 %v838_v54, 16 }
 0x15a   : > { %4059 = vmatpush3.bf16.msra.mxu1 %v4507_v61  ;;  %3136 = vmatprep.mubr.bf16.mxu1 %v3621_v8  ;;  %v866_v61 = vsel %vm5023_vm6, %v5449_v11, %v865_v4  ;;  %v3624_v11 = vcombine.low %v884_v2, %v893_v35 }
 0x15b   : > { %4060 = vmatprep.subr.bf16.mxu1 %v4511_v27  ;;  %v3623_v38 = vcombine.low %v866_v61, %v875_v25 }
 0x15c   : > { %2819 = vmatpush1.bf16.msra.mxu0 %v4499_v21  ;;  %v906_v21 = vrot.slane %v905_v9, 4 }
 0x15d   : > { %2820 = vmatprep.subr.bf16.mxu0 %v4506_v28 }
 0x15e   : > { %4061 = vmatpush3.bf16.msra.mxu1 %v4511_v27  ;;  %v911_v50 = vsel %vm5023_vm6, %v906_v21, %v910_v16 }
 0x15f   : > { %2792 = vmatmul.mubr.bf16.gmra.mrb[8].mxu0 %v3616_v51  ;;  %4062 = vmatprep.subr.bf16.mxu1 %v4516_v55  ;;  %v897_v51 = vrot.slane %v896_v40, 4 }
 0x160   : > { %2821 = vmatpush1.bf16.msra.mxu0 %v4504_v7  ;;  %2801 = vmatprep.mubr.bf16.mxu0 %v3621_v8  ;;  %v901_v8 = vrot.slane %v899_v17, 5 }
 0x161   : > { %2822 = vmatprep.subr.bf16.mxu0 %v4510_v39  ;;  %3137 = vmatmul.mubr.bf16.gmra.mrb[76].mxu1 %v3617_v62 }
 0x162   : > { %4063 = vmatpush3.bf16.msra.mxu1 %v4516_v55  ;;  %4066 = vmatprep.mubr.bf16.mxu1 %v3622_v15  ;;  %v902_v41 = vsel %vm5023_vm6, %v897_v51, %v901_v8 }
 0x163   : > { %4064 = vmatprep.subr.bf16.mxu1 %v4520_v10  ;;  %v3625_v19 = vcombine.low %v902_v41, %v911_v50 }
 0x164   : > { %2823 = vmatpush1.bf16.msra.mxu0 %v4508_v58 }
 0x165   : > { %2824 = vmatprep.subr.bf16.mxu0 %v4515_v5 }
 0x166   : > { %4065 = vmatpush3.bf16.msra.mxu1 %v4520_v10 }
 0x167   : > { %2802 = vmatmul.mubr.bf16.gmra.mrb[12].mxu0 %v3617_v62 }
 0x168   : > { %2825 = vmatpush1.bf16.msra.mxu0 %v4513_v18  ;;  %2844 = vmatprep.mubr.bf16.mxu0 %v4719_v0 }
 0x169   : > { %2826 = vmatprep.subr.bf16.mxu0 %v4519_v42  ;;  %4067 = vmatmul.mubr.bf16.vlgmr.msra.gmra.mrb[80].mxu1 %v3623_v38 }
 0x16a   : > { %4070 = vmatprep.mubr.bf16.mxu1 %v3624_v11 }
 0x16c   : > { %2827 = vmatpush1.bf16.msra.mxu0 %v4517_v53 }
 0x16f   : > { %2845 = vmatmul.mubr.bf16.vlgmr.msra.gmra.mrb[0].mxu0 %v3622_v15 }
 0x170   : > { %2854 = vmatprep.mubr.bf16.mxu0 %v4719_v0 }
 0x171   : > { %4071 = vmatmul.mubr.bf16.gmra.mrb[84].mxu1 %v3625_v19 }
 0x177   : > { %2855 = vmatmul.mubr.bf16.gmra.mrb[4].mxu0 %v3623_v38 }
 0x178   : > { %2864 = vmatprep.mubr.bf16.mxu0 %v4719_v0 }
 0x17f   : > { %2865 = vmatmul.mubr.bf16.gmra.mrb[8].mxu0 %v3624_v11 }
 0x180   : > { %2874 = vmatprep.mubr.bf16.mxu0 %v4719_v0 }
 0x187   : > { %2875 = vmatmul.mubr.bf16.gmra.mrb[12].mxu0 %v3625_v19 }
 0x19b   : > { %v5488_v27 = vpop.f32.mrb[0].mxu1 }
 0x19c   : > { %v5490_v57 = vpop.f32.mrb[1].mxu1 }
 0x19d   : > { %v5492_v63 = vpop.f32.mrb[2].mxu1 }
 0x19e   : > { %v5494_v46 = vpop.f32.mrb[3].mxu1 }
 0x1a3   : > { %v5496_v12 = vpop.f32.mrb[4].mxu1 }
 0x1a4   : > { %v5498_v28 = vpop.f32.mrb[5].mxu1 }
 0x1a5   : > { %v5500_v44 = vpop.f32.mrb[6].mxu1 }
 0x1a6   : > { %v5502_v3 = vpop.f32.mrb[7].mxu1 }
 0x1ab   : > { %v5504_v29 = vpop.f32.mrb[8].mxu1 }
 0x1ac   : > { %v5506_v0 = vpop.f32.mrb[9].mxu1 }
 0x1ad   : > { %v5508_v47 = vpop.f32.mrb[10].mxu1 }
 0x1ae   : > { %v5510_v6 = vpop.f32.mrb[11].mxu1 }
 0x1b3   : > { %v5512_v26 = vpop.f32.mrb[12].mxu1 }
 0x1b4   : > { %v5514_v49 = vpop.f32.mrb[13].mxu1 }
 0x1b5   : > { %v5516_v30 = vpop.f32.mrb[14].mxu1 }
 0x1b6   : > { %v5518_v33 = vpop.f32.mrb[15].mxu1 }
 0x1bb   : > { %v3894_v32 = vpop.f32.mrb[16].mxu1 }
 0x1bc   : > { %v3895_v45 = vpop.f32.mrb[17].mxu1 }
 0x1bd   : > { %v3896_v37 = vadd.f32 %v3895_v45, %v3894_v32  ;;  %v3897_v55 = vpop.f32.mrb[18].mxu1 }
 0x1be   : > { %v3898_v60 = vpop.f32.mrb[19].mxu1 }
 0x1bf   : > { %v3899_v52 = vadd.f32 %v3898_v60, %v3897_v55 }
 0x1c3   : > { %v3900_v14 = vpop.f32.mrb[20].mxu1 }
 0x1c4   : > { %v3901_v7 = vpop.f32.mrb[21].mxu1 }
 0x1c5   : > { %v3902_v43 = vadd.f32 %v3901_v7, %v3900_v14  ;;  %v3903_v22 = vpop.f32.mrb[22].mxu1 }
 0x1c6   : > { %v3904_v24 = vpop.f32.mrb[23].mxu1 }
 0x1c7   : > { %v3905_v36 = vadd.f32 %v3904_v24, %v3903_v22 }
 0x1cb   : > { %v3906_v39 = vpop.f32.mrb[24].mxu1 }
 0x1cc   : > { %v3907_v62 = vpop.f32.mrb[25].mxu1 }
 0x1cd   : > { %v3908_v48 = vadd.f32 %v3907_v62, %v3906_v39  ;;  %v3909_v56 = vpop.f32.mrb[26].mxu1 }
 0x1ce   : > { %v3910_v20 = vpop.f32.mrb[27].mxu1 }
 0x1cf   : > { %v3911_v10 = vadd.f32 %v3910_v20, %v3909_v56 }
 0x1d3   : > { %v3912_v15 = vpop.f32.mrb[28].mxu1 }
 0x1d4   : > { %v3913_v4 = vpop.f32.mrb[29].mxu1 }
 0x1d5   : > { %v3914_v23 = vadd.f32 %v3913_v4, %v3912_v15  ;;  %v3915_v1 = vpop.f32.mrb[30].mxu1 }
 0x1d6   : > { %v3916_v13 = vpop.f32.mrb[31].mxu1 }
 0x1d7   : > { %v3917_v59 = vadd.f32 %v3916_v13, %v3915_v1 }
 0x1db   : > { %v3934_v54 = vpop.f32.mrb[32].mxu1 }
 0x1dc   : > { %v3935_v34 = vpop.f32.mrb[33].mxu1 }
 0x1dd   : > { %v3936_v58 = vadd.f32 %v3935_v34, %v3934_v54  ;;  %v3937_v5 = vpop.f32.mrb[34].mxu1 }
 0x1de   : > { %v3938_v40 = vpop.f32.mrb[35].mxu1 }
 0x1df   : > { %v2985_v9 = vadd.f32 %v3936_v58, %v3896_v37  ;;  %v3939_v61 = vadd.f32 %v3938_v40, %v3937_v5 }
 0x1e1   : > { %v2988_v25 = vadd.f32 %v3939_v61, %v3899_v52 }
 0x1e3   : > { %v3940_v17 = vpop.f32.mrb[36].mxu1 }
 0x1e4   : > { %v3941_v31 = vpop.f32.mrb[37].mxu1 }
 0x1e5   : > { %v3942_v2 = vadd.f32 %v3941_v31, %v3940_v17  ;;  %v3943_v35 = vpop.f32.mrb[38].mxu1 }
 0x1e6   : > { %v3944_v18 = vpop.f32.mrb[39].mxu1 }
 0x1e7   : > { %v2993_v42 = vadd.f32 %v3942_v2, %v3902_v43  ;;  %v3945_v38 = vadd.f32 %v3944_v18, %v3943_v35 }
 0x1e9   : > { %v2996_v51 = vadd.f32 %v3945_v38, %v3905_v36 }
 0x1eb   : > { %v3946_v11 = vpop.f32.mrb[40].mxu1 }
 0x1ec   : > { %v3947_v8 = vpop.f32.mrb[41].mxu1 }
 0x1ed   : > { %v3948_v21 = vadd.f32 %v3947_v8, %v3946_v11  ;;  %v3949_v16 = vpop.f32.mrb[42].mxu1 }
 0x1ee   : > { %v3950_v53 = vpop.f32.mrb[43].mxu1 }
 0x1ef   : > { %v3001_v41 = vadd.f32 %v3948_v21, %v3908_v48  ;;  %v3951_v50 = vadd.f32 %v3950_v53, %v3949_v16 }
 0x1f1   : > { %v3004_v19 = vadd.f32 %v3951_v50, %v3911_v10 }
 0x1f3   : > { %v3952_v32 = vpop.f32.mrb[44].mxu1 }
 0x1f4   : > { %v3953_v45 = vpop.f32.mrb[45].mxu1 }
 0x1f5   : > { %v3954_v37 = vadd.f32 %v3953_v45, %v3952_v32  ;;  %v3955_v55 = vpop.f32.mrb[46].mxu1 }
 0x1f6   : > { %v3956_v60 = vpop.f32.mrb[47].mxu1 }
 0x1f7   : > { %v3009_v52 = vadd.f32 %v3954_v37, %v3914_v23  ;;  %v3957_v14 = vadd.f32 %v3956_v60, %v3955_v55 }
 0x1f9   : > { %v3012_v7 = vadd.f32 %v3957_v14, %v3917_v59 }
 0x1fb   : > { %v3974_v22 = vpop.f32.mrb[48].mxu1 }
 0x1fc   : > { %v3975_v43 = vpop.f32.mrb[49].mxu1 }
 0x1fd   : > { %v3976_v24 = vadd.f32 %v3975_v43, %v3974_v22  ;;  %v3977_v36 = vpop.f32.mrb[50].mxu1 }
 0x1fe   : > { %v3978_v39 = vpop.f32.mrb[51].mxu1 }
 0x1ff   : > { %v3050_v62 = vadd.f32 %v3976_v24, %v2985_v9  ;;  %v3979_v56 = vadd.f32 %v3978_v39, %v3977_v36 }
 0x201   : > { %v3053_v20 = vadd.f32 %v3979_v56, %v2988_v25  ;;  %v3212_v56 = vlaneseq }
 0x203   : > { %v3980_v15 = vpop.f32.mrb[52].mxu1 }
 0x204   : > { %v3981_v48 = vpop.f32.mrb[53].mxu1 }
 0x205   : > { %v3982_v4 = vadd.f32 %v3981_v48, %v3980_v15  ;;  %v3983_v10 = vpop.f32.mrb[54].mxu1 }
 0x206   : > { %v3984_v1 = vpop.f32.mrb[55].mxu1 }
 0x207   : > { %v3058_v13 = vadd.f32 %v3982_v4, %v2993_v42  ;;  %v3985_v54 = vadd.f32 %v3984_v1, %v3983_v10 }
 0x209   : > { %v3061_v34 = vadd.f32 %v3985_v54, %v2996_v51 }
 0x20b   : > { %v3986_v58 = vpop.f32.mrb[56].mxu1 }
 0x20c   : > { %v3987_v23 = vpop.f32.mrb[57].mxu1 }
 0x20d   : > { %v3988_v5 = vadd.f32 %v3987_v23, %v3986_v58  ;;  %v3989_v59 = vpop.f32.mrb[58].mxu1 }
 0x20e   : > { %v3990_v40 = vpop.f32.mrb[59].mxu1 }
 0x20f   : > { %v3066_v61 = vadd.f32 %v3988_v5, %v3001_v41  ;;  %v3991_v17 = vadd.f32 %v3990_v40, %v3989_v59  ;;  %v3251_v59 = vld [vmem:[#allocation9] sm:$0x7] }
 0x211   : > { %v3069_v31 = vadd.f32 %v3991_v17, %v3004_v19 }
 0x213   : > { %v3992_v2 = vpop.f32.mrb[60].mxu1 }
 0x214   : > { %v3993_v9 = vpop.f32.mrb[61].mxu1 }
 0x215   : > { %v3994_v35 = vadd.f32 %v3993_v9, %v3992_v2  ;;  %v3995_v25 = vpop.f32.mrb[62].mxu1 }
 0x216   : > { %v3996_v18 = vpop.f32.mrb[63].mxu1 }
 0x217   : > { %v3074_v38 = vadd.f32 %v3994_v35, %v3009_v52  ;;  %v3997_v11 = vadd.f32 %v3996_v18, %v3995_v25 }
 0x219   : > { %v3077_v8 = vadd.f32 %v3997_v11, %v3012_v7 }
 0x21b   : > { %v4014_v21 = vpop.f32.mrb[64].mxu1 }
 0x21c   : > { %v4015_v42 = vpop.f32.mrb[65].mxu1 }
 0x21d   : > { %v4016_v16 = vadd.f32 %v4015_v42, %v4014_v21  ;;  %v4017_v51 = vpop.f32.mrb[66].mxu1 }
 0x21e   : > { %v4018_v53 = vpop.f32.mrb[67].mxu1 }
 0x21f   : > { %v4019_v50 = vadd.f32 %v4018_v53, %v4017_v51  ;;  %v3115_v32 = vadd.f32 %v4016_v16, %v3050_v62  ;;  %v3213_v62 = vshrl.u32 %v3212_v56, 7 }
 0x221   : > { %v3118_v45 = vadd.f32 %v4019_v50, %v3053_v20  ;;  %v3222_v23 = vsub.s32 2, %v3213_v62  ;;  %v3218_v25 = vsub.s32 1, %v3213_v62 }
 0x224   : > { %v4020_v37 = vpop.f32.mrb[68].mxu1 }
 0x225   : > { %v4021_v41 = vpop.f32.mrb[69].mxu1 }
 0x226   : > { %v4022_v55 = vadd.f32 %v4021_v41, %v4020_v37  ;;  %v4023_v19 = vpop.f32.mrb[70].mxu1 }
 0x227   : > { %v4024_v60 = vpop.f32.mrb[71].mxu1 }
 0x228   : > { %v4025_v14 = vadd.f32 %v4024_v60, %v4023_v19  ;;  %v3123_v22 = vadd.f32 %v4022_v55, %v3058_v13 }
 0x22a   : > { %v3126_v43 = vadd.f32 %v4025_v14, %v3061_v34  ;;  %v3210_v34 = vld [vmem:[#allocation8] sm:$0x7] }
 0x22b   : > { %v5524_v17 = vrot.slane %v3210_v34, %v3222_v23  ;;  %v5535_v41 = vrot.slane %v3210_v34, %v3218_v25 }
 0x22c   : > { %v4026_v24 = vpop.f32.mrb[72].mxu1 }
 0x22d   : > { %v4027_v52 = vpop.f32.mrb[73].mxu1 }
 0x22e   : > { %v4028_v36 = vadd.f32 %v4027_v52, %v4026_v24  ;;  %v4029_v7 = vpop.f32.mrb[74].mxu1  ;;  %v5544_v24 = vrot.slane %v3251_v59, %v3218_v25 }
 0x22f   : > { %v4030_v39 = vpop.f32.mrb[75].mxu1 }
 0x230   : > { %v4031_v15 = vadd.f32 %v4030_v39, %v4029_v7  ;;  %v5520_v48 = vadd.f32 %v4028_v36, %v3066_v61  ;;  %v3214_v61 = vsub.s32 0, %v3213_v62 }
 0x232   : > { %v5522_v4 = vadd.f32 %v4031_v15, %v3069_v31  ;;  %v5526_v31 = vrot.slane %v3251_v59, %v3222_v23  ;;  %v5540_v60 = vrot.slane %v3251_v59, %v3214_v61 }
 0x234   : > { %v4032_v20 = vpop.f32.mrb[76].mxu1 }
 0x235   : > { %v4033_v10 = vpop.f32.mrb[77].mxu1 }
 0x236   : > { %v4034_v1 = vadd.f32 %v4033_v10, %v4032_v20  ;;  %v4035_v54 = vpop.f32.mrb[78].mxu1 }
 0x237   : > { %v4036_v58 = vpop.f32.mrb[79].mxu1 }
 0x238   : > { %v4037_v13 = vadd.f32 %v4036_v58, %v4035_v54  ;;  %v3139_v5 = vadd.f32 %v4034_v1, %v3074_v38 }
 0x23a   : > { %v3142_v40 = vadd.f32 %v4037_v13, %v3077_v8  ;;  %v5531_v8 = vrot.slane %v3210_v34, %v3214_v61 }
 0x23c   : > { %v4068_v2 = vpop.f32.mrb[80].mxu1 }
 0x23d   : > { %v3188_v9 = vadd.f32 %v4068_v2, %v3123_v22  ;;  %v3179_v35 = vpop.f32.mrb[81].mxu1 }
 0x23e   : > { %v3180_v18 = vadd.f32 %v3179_v35, %v3115_v32  ;;  %v4069_v11 = vpop.f32.mrb[82].mxu1 }
 0x23f   : > { %v3235_v21 = vmul.f32 %v5524_v17, %v3188_v9  ;;  %v3191_v42 = vadd.f32 %v4069_v11, %v3126_v43  ;;  %v3182_v16 = vpop.f32.mrb[83].mxu1 }
 0x240   : > { %v3229_v38 = vmul.f32 %v5524_v17, %v3180_v18  ;;  %v3183_v51 = vadd.f32 %v3182_v16, %v3118_v45 }
 0x241   : > { %v3276_v53 = vadd.f32 %v5526_v31, %v3235_v21  ;;  %v3238_v50 = vmul.f32 %v5524_v17, %v3191_v42 }
 0x242   : > { %v2846_v37 = vpop.f32.mrb[0].mxu0  ;;  %v3270_v32 = vadd.f32 %v5526_v31, %v3229_v38  ;;  %v3232_v55 = vmul.f32 %v5524_v17, %v3183_v51 }
 0x243   : > { %v4074_v19 = vadd.f32 %v2846_v37, %v5488_v27  ;;  %v3300_v14 = vmax.f32 %v3276_v53, 0.0  ;;  %v2848_v22 = vpop.f32.mrb[1].mxu0  ;;  %v3279_v45 = vadd.f32 %v5526_v31, %v3238_v50 }
 0x244   : > { %v4075_v43 = vadd.f32 %v2848_v22, %v5490_v57  ;;  %v3294_v52 = vmax.f32 %v3270_v32, 0.0  ;;  %v2850_v36 = vpop.f32.mrb[2].mxu0  ;;  %v3273_v7 = vadd.f32 %v5526_v31, %v3232_v55  ;;  %v4072_v39 = vpop.f32.mrb[84].mxu1 }
 0x245   : > { %v3227_v56 = vmul.f32 %v4074_v19, %v5531_v8  ;;  %v3867_v15 = vpack.c.bf16 %v3300_v14, %v3300_v14  ;;  %v4076_v27 = vadd.f32 %v2850_v36, %v5492_v63  ;;  %v3303_v62 = vmax.f32 %v3279_v45, 0.0  ;;  %v2852_v20 = vpop.f32.mrb[3].mxu0  ;;  %v3195_v10 = vpop.f32.mrb[85].mxu1 }
 0x246   : > { %v3228_v1 = vmul.f32 %v4075_v43, %v5535_v41  ;;  %v3863_v54 = vpack.c.bf16 %v3294_v52, %v3294_v52  ;;  %v4077_v57 = vadd.f32 %v2852_v20, %v5494_v46  ;;  %v3297_v58 = vmax.f32 %v3273_v7, 0.0  ;;  %v4073_v23 = vpop.f32.mrb[86].mxu1 }
 0x247   : > { %v3268_v13 = vadd.f32 %v5540_v60, %v3227_v56  ;;  %3425 = vst [vmem:[%s5554_s23 + $0x20] sm:$0xf] %v3867_v15  ;;  %v3230_v63 = vmul.f32 %v4076_v27, %v5531_v8  ;;  %v3869_v34 = vpack.c.bf16 %v3303_v62, %v3303_v62  ;;  %v3204_v59 = vadd.f32 %v4072_v39, %v3139_v5  ;;  %v3198_v2 = vpop.f32.mrb[87].mxu1 }
 0x248   : > { %v3269_v61 = vadd.f32 %v5544_v24, %v3228_v1  ;;  %3421 = vst [vmem:[%s5554_s23 + $0x8] sm:$0xf] %v3863_v54  ;;  %v3231_v46 = vmul.f32 %v4077_v57, %v5535_v41  ;;  %v3865_v9 = vpack.c.bf16 %v3297_v58, %v3297_v58  ;;  %v3196_v35 = vadd.f32 %v3195_v10, %v5520_v48 }
 0x249   : > { %v3292_v25 = vmax.f32 %v3268_v13, 0.0  ;;  %v3271_v18 = vadd.f32 %v5540_v60, %v3230_v63  ;;  %3427 = vst [vmem:[%s5554_s23 + $0x2c] sm:$0xf] %v3869_v34  ;;  %v3247_v11 = vmul.f32 %v5524_v17, %v3204_v59  ;;  %v3207_v21 = vadd.f32 %v4073_v23, %v3142_v40 }
 0x24a   : > { %v3293_v42 = vmax.f32 %v3269_v61, 0.0  ;;  %v3272_v16 = vadd.f32 %v5544_v24, %v3231_v46  ;;  %3423 = vst [vmem:[%s5554_s23 + $0x14] sm:$0xf] %v3865_v9  ;;  %v2856_v5 = vpop.f32.mrb[4].mxu0  ;;  %v3241_v38 = vmul.f32 %v5524_v17, %v3196_v35  ;;  %v3199_v51 = vadd.f32 %v3198_v2, %v5522_v4 }
 0x24b   : > { %v3295_v53 = vmax.f32 %v3271_v18, 0.0  ;;  %v4078_v48 = vadd.f32 %v2856_v5, %v5496_v12  ;;  %v3288_v50 = vadd.f32 %v5526_v31, %v3247_v11  ;;  %v2858_v37 = vpop.f32.mrb[5].mxu0  ;;  %v3250_v32 = vmul.f32 %v5524_v17, %v3207_v21 }
 0x24c   : > { %v3862_v55 = vpack.c.bf16 %v3293_v42, %v3292_v25  ;;  %v3296_v40 = vmax.f32 %v3272_v16, 0.0  ;;  %v4079_v19 = vadd.f32 %v2858_v37, %v5498_v28  ;;  %v3282_v14 = vadd.f32 %v5526_v31, %v3241_v38  ;;  %v2860_v22 = vpop.f32.mrb[6].mxu0 }
 0x24d   : > { %v3233_v45 = vmul.f32 %v4078_v48, %v5531_v8  ;;  %v3312_v4 = vmax.f32 %v3288_v50, 0.0  ;;  %v4080_v43 = vadd.f32 %v2860_v22, %v5500_v44  ;;  %v3291_v12 = vadd.f32 %v5526_v31, %v3250_v32  ;;  %v2862_v52 = vpop.f32.mrb[7].mxu0 }
 0x24e   : > { %3420 = vst [vmem:[%s5554_s23] sm:$0xff] %v3862_v55  ;;  %v3864_v36 = vpack.c.bf16 %v3296_v40, %v3295_v53  ;;  %v3234_v7 = vmul.f32 %v4079_v19, %v5535_v41  ;;  %v3306_v39 = vmax.f32 %v3282_v14, 0.0  ;;  %v4081_v28 = vadd.f32 %v2862_v52, %v5502_v3 }
 0x24f   : > { %v3274_v56 = vadd.f32 %v5540_v60, %v3233_v45  ;;  %v3875_v15 = vpack.c.bf16 %v3312_v4, %v3312_v4  ;;  %v3236_v27 = vmul.f32 %v4080_v43, %v5531_v8  ;;  %v3315_v62 = vmax.f32 %v3291_v12, 0.0 }
 0x250   : > { %3422 = vst [vmem:[%s5554_s23 + $0xc] sm:$0xff] %v3864_v36  ;;  %v3275_v44 = vadd.f32 %v5544_v24, %v3234_v7  ;;  %v3871_v20 = vpack.c.bf16 %v3306_v39, %v3306_v39  ;;  %v3237_v10 = vmul.f32 %v4081_v28, %v5535_v41  ;;  %v3244_v1 = vmul.f32 %v5524_v17, %v3199_v51 }
 0x251   : > { %v3298_v54 = vmax.f32 %v3274_v56, 0.0  ;;  %3433 = vst [vmem:[%s5554_s23 + $0x50] sm:$0xf] %v3875_v15  ;;  %v3277_v57 = vadd.f32 %v5540_v60, %v3236_v27  ;;  %v3877_v3 = vpack.c.bf16 %v3315_v62, %v3315_v62 }
 0x252   : > { %v3299_v58 = vmax.f32 %v3275_v44, 0.0  ;;  %3429 = vst [vmem:[%s5554_s23 + $0x38] sm:$0xf] %v3871_v20  ;;  %v3278_v23 = vadd.f32 %v5544_v24, %v3237_v10  ;;  %v3285_v13 = vadd.f32 %v5526_v31, %v3244_v1  ;;  %v2866_v63 = vpop.f32.mrb[8].mxu0 }
 0x253   : > { %v3301_v34 = vmax.f32 %v3277_v57, 0.0  ;;  %3435 = vst [vmem:[%s5554_s23 + $0x5c] sm:$0xf] %v3877_v3  ;;  %v4082_v59 = vadd.f32 %v2866_v63, %v5504_v29  ;;  %v2868_v2 = vpop.f32.mrb[9].mxu0 }
 0x254   : > { %v3866_v17 = vpack.c.bf16 %v3299_v58, %v3298_v54  ;;  %v3302_v61 = vmax.f32 %v3278_v23, 0.0  ;;  %v3309_v46 = vmax.f32 %v3285_v13, 0.0  ;;  %v4083_v9 = vadd.f32 %v2868_v2, %v5506_v0  ;;  %v2870_v35 = vpop.f32.mrb[10].mxu0 }
 0x255   : > { %v3239_v25 = vmul.f32 %v4082_v59, %v5531_v8  ;;  %v4084_v18 = vadd.f32 %v2870_v35, %v5508_v47  ;;  %v2872_v11 = vpop.f32.mrb[11].mxu0 }
 0x256   : > { %3424 = vst [vmem:[%s5554_s23 + $0x18] sm:$0xff] %v3866_v17  ;;  %v3868_v31 = vpack.c.bf16 %v3302_v61, %v3301_v34  ;;  %v3873_v21 = vpack.c.bf16 %v3309_v46, %v3309_v46  ;;  %v3240_v42 = vmul.f32 %v4083_v9, %v5535_v41  ;;  %v4085_v29 = vadd.f32 %v2872_v11, %v5510_v6 }
 0x257   : > { %v3280_v16 = vadd.f32 %v5540_v60, %v3239_v25  ;;  %v3242_v5 = vmul.f32 %v4084_v18, %v5531_v8 }
 0x258   : > { %3426 = vst [vmem:[%s5554_s23 + $0x24] sm:$0xff] %v3868_v31  ;;  %3431 = vst [vmem:[%s5554_s23 + $0x44] sm:$0xf] %v3873_v21  ;;  %v3281_v0 = vadd.f32 %v5544_v24, %v3240_v42  ;;  %v3243_v38 = vmul.f32 %v4085_v29, %v5535_v41 }
 0x259   : > { %v3304_v47 = vmax.f32 %v3280_v16, 0.0  ;;  %v3283_v51 = vadd.f32 %v5540_v60, %v3242_v5 }
 0x25a   : > { %v3305_v53 = vmax.f32 %v3281_v0, 0.0  ;;  %v3284_v48 = vadd.f32 %v5544_v24, %v3243_v38  ;;  %v2876_v50 = vpop.f32.mrb[12].mxu0 }
 0x25b   : > { %v3307_v37 = vmax.f32 %v3283_v51, 0.0  ;;  %v4086_v6 = vadd.f32 %v2876_v50, %v5512_v26  ;;  %v2878_v32 = vpop.f32.mrb[13].mxu0 }
 0x25c   : > { %v3870_v55 = vpack.c.bf16 %v3305_v53, %v3304_v47  ;;  %v3308_v40 = vmax.f32 %v3284_v48, 0.0  ;;  %v4087_v19 = vadd.f32 %v2878_v32, %v5514_v49  ;;  %v2880_v14 = vpop.f32.mrb[14].mxu0 }
 0x25d   : > { %v3245_v22 = vmul.f32 %v4086_v6, %v5531_v8  ;;  %v4088_v45 = vadd.f32 %v2880_v14, %v5516_v30  ;;  %v2882_v4 = vpop.f32.mrb[15].mxu0 }
 0x25e   : > { %3428 = vst [vmem:[%s5554_s23 + $0x30] sm:$0xff] %v3870_v55  ;;  %v3872_v43 = vpack.c.bf16 %v3308_v40, %v3307_v37  ;;  %v3246_v12 = vmul.f32 %v4087_v19, %v5535_v41  ;;  %v4089_v52 = vadd.f32 %v2882_v4, %v5518_v33 }
 0x25f   : > { %v3286_v26 = vadd.f32 %v5540_v60, %v3245_v22  ;;  %v3248_v36 = vmul.f32 %v4088_v45, %v5531_v8 }
 0x260   : > { %3430 = vst [vmem:[%s5554_s23 + $0x3c] sm:$0xff] %v3872_v43  ;;  %v3287_v49 = vadd.f32 %v5544_v24, %v3246_v12  ;;  %v3249_v30 = vmul.f32 %v4089_v52, %v5535_v41 }
 0x261   : > { %v3310_v7 = vmax.f32 %v3286_v26, 0.0  ;;  %v3289_v39 = vadd.f32 %v5540_v60, %v3248_v36 }
 0x262   : > { %v3311_v28 = vmax.f32 %v3287_v49, 0.0  ;;  %v3290_v33 = vadd.f32 %v5544_v24, %v3249_v30 }
 0x263   : > { %v3313_v56 = vmax.f32 %v3289_v39, 0.0 }
 0x264   : > { %v3874_v15 = vpack.c.bf16 %v3311_v28, %v3310_v7  ;;  %v3314_v27 = vmax.f32 %v3290_v33, 0.0 }
 0x266   : > { %3432 = vst [vmem:[%s5554_s23 + $0x48] sm:$0xff] %v3874_v15  ;;  %v3876_v8 = vpack.c.bf16 %v3314_v27, %v3313_v56 }
 0x268   : > { %3434 = vst [vmem:[%s5554_s23 + $0x54] sm:$0xff] %v3876_v8 }
 0x269   : > { %4648 = shalt.err (!%p4645_p4)
}
 0x26a   : > { %s4649_s5 = scalar_lea.hbm %s5626_s20, 1536  ;;  %s4653_s25 = scalar_lea.hbm %s5678_s4, 3072 }
 0x26b   : > { %p4650_p9 = scmp.ne.s32.totalorder %s5626_s20, %s4649_s5  ;;  %p4654_p8 = scmp.lt.u32.totalorder %s5626_s20, %s5678_s4 }
 0x26c   : > { %p4655_p13 = scmp.lt.u32.totalorder %s4653_s25, %s4649_s5  ;;  %p4657_p10 = scmp.lt.u32.totalorder %s4649_s5, %s5626_s20 }
 0x26d   : > { %p4651_p0 = pnand %p4650_p9, %p4894_p5 }
 0x26e   : > { %p4656_p6 = por %p4655_p13, %p4654_p8 }
 0x26f   : > { %p4652_p11 = pneg %p4651_p0 }
 0x270   : > { %p4658_p3 = por %p4657_p10, %p4656_p6 }
 0x272   : > { %p4659_p7 = pnand %p4658_p3, %p4652_p11 }
 0x274   : > { %4662 = shalt.err (!%p4659_p7)
}
 0x275   : > { %s4721_s23 = smov 192   ;;  %s4722_s29 = smov 12  }
 0x276   : > { %4154 = dma.vmem_to_hbm [thread:$0]  (%p4894_p5), %s5628_s6, 1536, %s5626_s20, %s3437_s19, %s4721_s23, %s4721_s23, %s4722_s29  }
 0x277 PF: > { %s3465_s7 = sand.u32 1, %s4697_s15   ;;  %p5700_p12 = scmp.ne.s32.totalorder %s5683_s22, 0 }
 0x278   : > { %p5701_p2 = scmp.ge.s32.totalorder %s4709_s18, 2  ;;  %s3466_s8 = scalar_lea.sflag [#allocation5], %s3465_s7 }
 0x27a   : > { %p4171_p1 = pnand %p5701_p2, %p5700_p12 }
 0x27c   : > { %4692 = dma.done.wait (!%p4171_p1), %s3466_s8, 1536  }
 0x27d   : > { %4694 = vsyncadd (!%p4171_p1), %s3466_s8, 4294965760  ;;  %p19_p4 = scmp.ge.s32.totalorder %s4880_s10, 4   ;;  %s5702_s15 = smov %s4701_s16 }
 0x27e   : > { %s5703_s16 = smov %s4705_s17  ;;  %s5704_s17 = smov %s4890_s12 }
 0x27f   : > { %s5705_s18 = smov %s4880_s10  ;;  %21 = sbr.rel (!%p19_p4) target bundleno = 7 (0x7), region = 95 }
 0x286   :  { %3471 = vsyncpa [#allocation4], 1 }
 0x287   :  { %3473 = vsyncpa [#allocation4 + $0x1], 1 }
 0x288   :  { %3474 = vsyncpa [#allocation7], 1 }
 0x289   :  { %3475 = vsyncpa [#allocation10], 1 }
 0x28a   :  { %3476 = vsyncpa [#allocation5], 1 }
 0x28b   :  { %3478 = vsyncpa [#allocation5 + $0x1], 1 }

</bundles_post_ra>
